<compile_context>
chip_gen: v6e
topology: v6e:2x2x1
jax: 0.10.0
libtpu: 0.0.40
codegen_flags: <defaults>
</compile_context>

<pallas_src>
import functools

import jax
import jax.numpy as jnp
import numpy as np
from jax.experimental import pallas as pl
from jax.experimental.pallas import tpu as pltpu


def _uconv_group_kernel(skip_ref, x_ref, t1_ref, t2_ref, b1_ref, b2_ref,
                        dup_w_ref, sel_h_ref, o_ref, x_pad, h1_pad,
                        *, Nb, H, W, Cs, Cx, C1, C2, upscale):
    """One grid step = Nb batch elements; every tensor is a lane-dense 2-D slab.

    skip_ref : (Nb, H, W*Cs)               x_ref  : (Nb, H, W*Cx)
    t1_ref   : (3, W*(Cs+Cx), W*C1) bf16   t2_ref : (3, W*C1, W*C2) bf16
    b1_ref   : (1, W*C1) f32               b2_ref : (1, W*C2) f32
    dup_w_ref: (W*C2, 2*W*C2) bf16         (2x nearest along W; unused if not upscale)
    sel_h_ref: (Nb*Ho, Nb*(H+2)-2) bf16    (drops halo rows; 2x nearest along H)
    o_ref    : (Nb, Ho, Wo*C2)
    x_pad    : (Nb*(H+2), W*(Cs+Cx)) f32 scratch  (stacked H-padded input slab)
    h1_pad   : (Nb*(H+2), W*C1)      f32 scratch  (stacked H-padded conv1 activation)
    """
    f32, bf16 = jnp.float32, jnp.bfloat16
    M = Nb * (H + 2)
    WCs, WCin, WC1, WC2 = W * Cs, W * (Cs + Cx), W * C1, W * C2

    # ---- Stacked padded input slab.  Fused channel concat: skip | x occupy separate
    # lane blocks (w1's band is stacked along K to match).  Only the 2*Nb halo rows are
    # zeroed -- interior rows are fully overwritten right after -- and this runs every
    # grid step (scratch persists across steps / TensorCores).
    for b in range(Nb):
        r0 = b * (H + 2)
        x_pad[r0:r0 + 1, :] = jnp.zeros((1, WCin), f32)
        x_pad[r0 + H + 1:r0 + H + 2, :] = jnp.zeros((1, WCin), f32)
        x_pad[r0 + 1:r0 + H + 1, :WCs] = skip_ref[b].astype(f32)
        x_pad[r0 + 1:r0 + H + 1, WCs:] = x_ref[b].astype(f32)

    # ---- conv1 + SiLU: 3 banded (block-Toeplitz) matmuls with M = Nb*(H+2).
    # acc1[i] = sum_kh full[kh][i+kh]; the valid output row (b, r) sits at
    # i = b*(H+2) + r, and the rows mixing two batches land on halo positions only.
    xcat = x_pad[...].astype(bf16)                      # bf16 MXU operands
    acc1 = jnp.zeros((M - 2, WC1), f32)
    for kh in range(3):
        full = jnp.dot(xcat, t1_ref[kh], preferred_element_type=f32)   # (M, WC1)
        acc1 = acc1 + full[kh:kh + M - 2, :]
    acc1 = acc1 + b1_ref[...]
    h1 = acc1 * jax.nn.sigmoid(acc1)                    # SiLU (EUP), f32

    # conv1 activation never leaves VMEM; re-pad for conv2 (interior write, then zero
    # the halo rows -- intermediate halos were overwritten with garbage by the write).
    h1_pad[1:M - 1, :] = h1
    for b in range(Nb):
        r0 = b * (H + 2)
        h1_pad[r0:r0 + 1, :] = jnp.zeros((1, WC1), f32)
        h1_pad[r0 + H + 1:r0 + H + 2, :] = jnp.zeros((1, WC1), f32)

    # ---- conv2 + SiLU, same banded structure.
    h1c = h1_pad[...].astype(bf16)
    acc2 = jnp.zeros((M - 2, WC2), f32)
    for kh in range(3):
        full = jnp.dot(h1c, t2_ref[kh], preferred_element_type=f32)    # (M, WC2)
        acc2 = acc2 + full[kh:kh + M - 2, :]
    acc2 = acc2 + b2_ref[...]
    y = acc2 * jax.nn.sigmoid(acc2)                     # (M-2, WC2), valid @ b*(H+2)+r

    # ---- Fused 2x nearest upsample + compaction: exact 0/1 matmuls keep everything
    # 2-D / lane-dense; sel_h both drops the halo/garbage rows and duplicates rows.
    yb = y.astype(bf16)
    if upscale:
        yw = jnp.dot(yb, dup_w_ref[...], preferred_element_type=f32)   # (M-2, 2*WC2)
        out = jnp.dot(sel_h_ref[...], yw.astype(bf16),
                      preferred_element_type=f32)                      # (Nb*2H, 2*WC2)
        Ho = 2 * H
    else:
        out = jnp.dot(sel_h_ref[...], yb, preferred_element_type=f32)  # (Nb*H, WC2)
        Ho = H

    for b in range(Nb):                                 # aligned, unmasked row stores
        o_ref[b] = out[b * Ho:(b + 1) * Ho, :].astype(o_ref.dtype)


def prepare_uconv_params(params, skip_channels, H, W, batch_block, upscale=True):
    """One-time weight prep: banded (block-Toeplitz) conv matrices (w1 stacked along K
    for the fused concat), lane-tiled biases, and the exact 0/1 upsample / selection
    matrices.  Band / dup / sel matrices are stored in bf16 (dup/sel exact in bf16)."""
    w1 = np.asarray(params["w1"], np.float32)           # (3, 3, Cin, C1)  HWIO
    w2 = np.asarray(params["w2"], np.float32)           # (3, 3, C1,  C2)
    b1 = np.asarray(params["b1"], np.float32)
    b2 = np.asarray(params["b2"], np.float32)
    Cs = skip_channels
    C2 = w2.shape[-1]
    Nb = batch_block
    M = Nb * (H + 2)

    def band(w_part):
        # (3, 3, Ci, Co) -> T with T[kh][(w+kw-1)*Ci + c, w*Co + o] = w_part[kh, kw, c, o]
        # (zero outside the band => "same" padding along W handled by the weights).
        _, _, Ci, Co = w_part.shape
        t = np.zeros((3, W * Ci, W * Co), np.float32)
        for kh in range(3):
            for kw in range(3):
                ind = np.eye(W, W, k=-(kw - 1), dtype=np.float32)   # [w', w], w' = w+kw-1
                t[kh] += np.kron(ind, w_part[kh, kw])
        return t

    # TODO(synk): banded weights scale O(W^2); for large frames, tile W (block-tridiagonal
    # bands with a 1-column halo) and single-buffer the constant weight blocks before
    # scaling resolution on v7x (64 MiB VMEM, 32 MiB scoped default).
    t1 = np.concatenate([band(w1[:, :, :Cs, :]), band(w1[:, :, Cs:, :])], axis=1)
    t2 = band(w2)

    # Row selection(+duplication): compacts the stacked accumulator (valid rows at
    # b*(H+2)+r) into contiguous per-batch output rows, duplicating 2x if upscaling.
    Ho = 2 * H if upscale else H
    sel = np.zeros((Nb * Ho, M - 2), np.float32)
    for b in range(Nb):
        for r in range(H):
            src = b * (H + 2) + r
            if upscale:
                sel[b * Ho + 2 * r + 0, src] = 1.0
                sel[b * Ho + 2 * r + 1, src] = 1.0
            else:
                sel[b * Ho + r, src] = 1.0

    dup_w = np.kron(np.repeat(np.eye(W, dtype=np.float32), 2, axis=1),
                    np.eye(C2, dtype=np.float32))                      # (W*C2, 2W*C2)

    bf16 = jnp.bfloat16
    return {
        "t1": jnp.asarray(t1, bf16),
        "t2": jnp.asarray(t2, bf16),
        "b1t": jnp.asarray(np.tile(b1, W)[None, :]),                   # (1, W*C1) f32
        "b2t": jnp.asarray(np.tile(b2, W)[None, :]),                   # (1, W*C2) f32
        "dup_w": jnp.asarray(dup_w, bf16),
        "sel_h": jnp.asarray(sel, bf16),
        "batch_block": Nb,
        "upscale": upscale,
    }


def uconv_group_forward(skip_nchw, x_nchw, prep, nchw_out=True):
    """Matches UConvGroup.forward: NCHW in; NCHW out by default.  nchw_out=False returns
    the kernel's native lane-dense NHWC output and skips the trailing XLA transpose."""
    N, Cs, H, W = skip_nchw.shape
    Cx = x_nchw.shape[1]
    Nb = prep["batch_block"]
    upscale = prep["upscale"]
    assert N % Nb == 0, f"batch {N} must be divisible by batch_block {Nb}"
    C1 = prep["b1t"].shape[1] // W
    C2 = prep["b2t"].shape[1] // W
    Cin = Cs + Cx
    M = Nb * (H + 2)
    Ho, Wo = (2 * H, 2 * W) if upscale else (H, W)

    # NCHW -> lane-dense rows (N, H, W*C) (channels-last inside each row, so the banded
    # conv matrices contract over [w, c] in one K axis).
    skip_f = jnp.transpose(skip_nchw, (0, 2, 3, 1)).reshape(N, H, W * Cs)
    x_f = jnp.transpose(x_nchw, (0, 2, 3, 1)).reshape(N, H, W * Cx)

    kernel = functools.partial(_uconv_group_kernel, Nb=Nb, H=H, W=W, Cs=Cs, Cx=Cx,
                               C1=C1, C2=C2, upscale=upscale)

    out_flat = pl.pallas_call(
        kernel,
        out_shape=jax.ShapeDtypeStruct((N, Ho, Wo * C2), skip_nchw.dtype),
        grid=(N // Nb,),
        in_specs=[
            pl.BlockSpec((Nb, H, W * Cs), lambda n: (n, 0, 0)),
            pl.BlockSpec((Nb, H, W * Cx), lambda n: (n, 0, 0)),
            pl.BlockSpec((3, W * Cin, W * C1), lambda n: (0, 0, 0)),
            pl.BlockSpec((3, W * C1, W * C2), lambda n: (0, 0, 0)),
            pl.BlockSpec((1, W * C1), lambda n: (0, 0)),
            pl.BlockSpec((1, W * C2), lambda n: (0, 0)),
            pl.BlockSpec((W * C2, 2 * W * C2), lambda n: (0, 0)),
            pl.BlockSpec((Nb * Ho, M - 2), lambda n: (0, 0)),
        ],
        out_specs=pl.BlockSpec((Nb, Ho, Wo * C2), lambda n: (n, 0, 0)),
        scratch_shapes=[
            pltpu.VMEM((M, W * Cin), jnp.float32),
            pltpu.VMEM((M, W * C1), jnp.float32),
        ],
        compiler_params=pltpu.CompilerParams(
            dimension_semantics=("parallel",),
            vmem_limit_bytes=32 * 1024 * 1024),
    )(skip_f, x_f, prep["t1"], prep["t2"], prep["b1t"], prep["b2t"],
      prep["dup_w"], prep["sel_h"])

    out = out_flat.reshape(N, Ho, Wo, C2)       # free (contiguous) reshape
    if not nchw_out:
        return out                              # lane-dense NHWC: preferred downstream
    # TODO(synk): this NHWC->NCHW transpose re-reads/writes the 4x-upsampled tensor in
    # XLA; keep nchw_out=False (or fuse the layout change into the consumer) when the
    # surrounding pipeline is NHWC.
    return jnp.transpose(out, (0, 3, 1, 2))


def _reference_forward(skip_nchw, x_nchw, params, upscale=True):
    """Pure-JAX reference (lax.conv) for validation."""
    x = jnp.concatenate((skip_nchw, x_nchw), axis=1)
    x = jnp.transpose(x, (0, 2, 3, 1))  # NHWC
    dn = jax.lax.conv_dimension_numbers(x.shape, params["w1"].shape,
                                        ("NHWC", "HWIO", "NHWC"))

    def conv_silu(x, w, b):
        y = jax.lax.conv_general_dilated(x, w, (1, 1), "SAME",
                                         dimension_numbers=dn) + b
        return y * jax.nn.sigmoid(y)

    x = conv_silu(x, params["w1"], params["b1"])
    x = conv_silu(x, params["w2"], params["b2"])
    if upscale:
        x = jnp.repeat(jnp.repeat(x, 2, axis=1), 2, axis=2)
    return jnp.transpose(x, (0, 3, 1, 2))


if __name__ == "__main__":
    # UConvGroup(in_channels=8, out_channels=8) on 16x16 maps, skip/x each 4 channels.
    N = 8                          # batch
    Nb = 4                         # images per grid step -> M = Nb*(H+2) = 72, grid = 2
    skip_C, x_C = 4, 4             # concatenated -> in_channels = 8
    in_channels = skip_C + x_C
    out_channels = 8
    H = W = 16

    key = jax.random.PRNGKey(0)
    k1, k2, k3, k4, k5, k6 = jax.random.split(key, 6)

    skip = jax.random.normal(k1, (N, skip_C, H, W), jnp.float32)
    x = jax.random.normal(k2, (N, x_C, H, W), jnp.float32)

    # Deterministic synthetic parameters (HWIO layout for weights).
    params = {
        "w1": 0.1 * jax.random.normal(k3, (3, 3, in_channels, out_channels), jnp.float32),
        "b1": 0.1 * jax.random.normal(k4, (out_channels,), jnp.float32),
        "w2": 0.1 * jax.random.normal(k5, (3, 3, out_channels, out_channels), jnp.float32),
        "b2": 0.1 * jax.random.normal(k6, (out_channels,), jnp.float32),
    }

    prep = prepare_uconv_params(params, skip_channels=skip_C, H=H, W=W,
                                batch_block=Nb, upscale=True)

    out = uconv_group_forward(skip, x, prep, nchw_out=True)
    out = jax.block_until_ready(out)

    ref = jax.block_until_ready(_reference_forward(skip, x, params, upscale=True))
    assert out.shape == (N, out_channels, 2 * H, 2 * W), out.shape
    # bf16 MXU operands (f32 accumulation) -> relaxed tolerance vs the f32 reference.
    np.testing.assert_allclose(np.asarray(out), np.asarray(ref), rtol=3e-2, atol=3e-2)

    print("KERNEL_OK")
</pallas_src>

<mosaic_0001>
module attributes {stable_mosaic.version = 11 : i64} {
  func.func @_uconv_group_kernel(%arg0: i32, %arg1: memref<4x16x64xf32, #tpu.memory_space<vmem>>, %arg2: memref<4x16x64xf32, #tpu.memory_space<vmem>>, %arg3: memref<3x128x128xbf16, #tpu.memory_space<vmem>>, %arg4: memref<3x128x128xbf16, #tpu.memory_space<vmem>>, %arg5: memref<1x128xf32, #tpu.memory_space<vmem>>, %arg6: memref<1x128xf32, #tpu.memory_space<vmem>>, %arg7: memref<128x256xbf16, #tpu.memory_space<vmem>>, %arg8: memref<128x70xbf16, #tpu.memory_space<vmem>>, %arg9: memref<4x32x256xf32, #tpu.memory_space<vmem>>, %arg10: memref<72x128xf32, #tpu.memory_space<vmem>>, %arg11: memref<72x128xf32, #tpu.memory_space<vmem>>) attributes {dimension_semantics = [#tpu.dimension_semantics<parallel>], iteration_bounds = array<i64: 2>, scalar_prefetch = 0 : i64, scratch_operands = 2 : i64, tpu.core_type = #tpu.core_type<tc>, window_params = [{transform_indices = @transform_0, window_bounds = array<i64: 4, 16, 64>}, {transform_indices = @transform_1, window_bounds = array<i64: 4, 16, 64>}, {pipeline_mode = #tpu.pipeline_mode<synchronous>, transform_indices = @transform_2, window_bounds = array<i64: 3, 128, 128>}, {pipeline_mode = #tpu.pipeline_mode<synchronous>, transform_indices = @transform_3, window_bounds = array<i64: 3, 128, 128>}, {pipeline_mode = #tpu.pipeline_mode<synchronous>, transform_indices = @transform_4, window_bounds = array<i64: 1, 128>}, {pipeline_mode = #tpu.pipeline_mode<synchronous>, transform_indices = @transform_5, window_bounds = array<i64: 1, 128>}, {pipeline_mode = #tpu.pipeline_mode<synchronous>, transform_indices = @transform_6, window_bounds = array<i64: 128, 256>}, {pipeline_mode = #tpu.pipeline_mode<synchronous>, transform_indices = @transform_7, window_bounds = array<i64: 128, 70>}, {transform_indices = @transform_8, window_bounds = array<i64: 4, 32, 256>}]} {
    %cst = arith.constant 0.000000e+00 : f32
    %0 = vector.broadcast %cst : f32 to vector<1x128xf32>
    %c0 = arith.constant 0 : index
    %c0_0 = arith.constant 0 : index
    %1 = vector.load %arg10[%c0, %c0_0] : memref<72x128xf32, #tpu.memory_space<vmem>>, vector<1x128xf32>
    tpu.vector_store %arg10[%c0, %c0_0], %0 {strides = array<i32>} : memref<72x128xf32, #tpu.memory_space<vmem>>, vector<1x128xf32>,
    %cst_1 = arith.constant 0.000000e+00 : f32
    %2 = vector.broadcast %cst_1 : f32 to vector<1x128xf32>
    %c17 = arith.constant 17 : index
    %c0_2 = arith.constant 0 : index
    %3 = vector.load %arg10[%c17, %c0_2] : memref<72x128xf32, #tpu.memory_space<vmem>>, vector<1x128xf32>
    tpu.vector_store %arg10[%c17, %c0_2], %2 {strides = array<i32>} : memref<72x128xf32, #tpu.memory_space<vmem>>, vector<1x128xf32>,
    %c0_3 = arith.constant 0 : index
    %c0_4 = arith.constant 0 : index
    %c0_5 = arith.constant 0 : index
    %4 = vector.load %arg1[%c0_3, %c0_4, %c0_5] : memref<4x16x64xf32, #tpu.memory_space<vmem>>, vector<1x16x64xf32>
    %5 = vector.shape_cast %4 : vector<1x16x64xf32> to vector<16x64xf32>
    %c1 = arith.constant 1 : index
    %c0_6 = arith.constant 0 : index
    %6 = vector.load %arg10[%c1, %c0_6] : memref<72x128xf32, #tpu.memory_space<vmem>>, vector<16x64xf32>
    tpu.vector_store %arg10[%c1, %c0_6], %5 {strides = array<i32>} : memref<72x128xf32, #tpu.memory_space<vmem>>, vector<16x64xf32>,
    %c0_7 = arith.constant 0 : index
    %c0_8 = arith.constant 0 : index
    %c0_9 = arith.constant 0 : index
    %7 = vector.load %arg2[%c0_7, %c0_8, %c0_9] : memref<4x16x64xf32, #tpu.memory_space<vmem>>, vector<1x16x64xf32>
    %8 = vector.shape_cast %7 : vector<1x16x64xf32> to vector<16x64xf32>
    %c1_10 = arith.constant 1 : index
    %c64 = arith.constant 64 : index
    %9 = vector.load %arg10[%c1_10, %c64] : memref<72x128xf32, #tpu.memory_space<vmem>>, vector<16x64xf32>
    tpu.vector_store %arg10[%c1_10, %c64], %8 {strides = array<i32>} : memref<72x128xf32, #tpu.memory_space<vmem>>, vector<16x64xf32>,
    %cst_11 = arith.constant 0.000000e+00 : f32
    %10 = vector.broadcast %cst_11 : f32 to vector<1x128xf32>
    %c18 = arith.constant 18 : index
    %c0_12 = arith.constant 0 : index
    %11 = vector.load %arg10[%c18, %c0_12] : memref<72x128xf32, #tpu.memory_space<vmem>>, vector<1x128xf32>
    tpu.vector_store %arg10[%c18, %c0_12], %10 {strides = array<i32>} : memref<72x128xf32, #tpu.memory_space<vmem>>, vector<1x128xf32>,
    %cst_13 = arith.constant 0.000000e+00 : f32
    %12 = vector.broadcast %cst_13 : f32 to vector<1x128xf32>
    %c35 = arith.constant 35 : index
    %c0_14 = arith.constant 0 : index
    %13 = vector.load %arg10[%c35, %c0_14] : memref<72x128xf32, #tpu.memory_space<vmem>>, vector<1x128xf32>
    tpu.vector_store %arg10[%c35, %c0_14], %12 {strides = array<i32>} : memref<72x128xf32, #tpu.memory_space<vmem>>, vector<1x128xf32>,
    %c1_15 = arith.constant 1 : index
    %c0_16 = arith.constant 0 : index
    %c0_17 = arith.constant 0 : index
    %14 = vector.load %arg1[%c1_15, %c0_16, %c0_17] : memref<4x16x64xf32, #tpu.memory_space<vmem>>, vector<1x16x64xf32>
    %15 = vector.shape_cast %14 : vector<1x16x64xf32> to vector<16x64xf32>
    %c19 = arith.constant 19 : index
    %c0_18 = arith.constant 0 : index
    %16 = vector.load %arg10[%c19, %c0_18] : memref<72x128xf32, #tpu.memory_space<vmem>>, vector<16x64xf32>
    tpu.vector_store %arg10[%c19, %c0_18], %15 {strides = array<i32>} : memref<72x128xf32, #tpu.memory_space<vmem>>, vector<16x64xf32>,
    %c1_19 = arith.constant 1 : index
    %c0_20 = arith.constant 0 : index
    %c0_21 = arith.constant 0 : index
    %17 = vector.load %arg2[%c1_19, %c0_20, %c0_21] : memref<4x16x64xf32, #tpu.memory_space<vmem>>, vector<1x16x64xf32>
    %18 = vector.shape_cast %17 : vector<1x16x64xf32> to vector<16x64xf32>
    %c19_22 = arith.constant 19 : index
    %c64_23 = arith.constant 64 : index
    %19 = vector.load %arg10[%c19_22, %c64_23] : memref<72x128xf32, #tpu.memory_space<vmem>>, vector<16x64xf32>
    tpu.vector_store %arg10[%c19_22, %c64_23], %18 {strides = array<i32>} : memref<72x128xf32, #tpu.memory_space<vmem>>, vector<16x64xf32>,
    %cst_24 = arith.constant 0.000000e+00 : f32
    %20 = vector.broadcast %cst_24 : f32 to vector<1x128xf32>
    %c36 = arith.constant 36 : index
    %c0_25 = arith.constant 0 : index
    %21 = vector.load %arg10[%c36, %c0_25] : memref<72x128xf32, #tpu.memory_space<vmem>>, vector<1x128xf32>
    tpu.vector_store %arg10[%c36, %c0_25], %20 {strides = array<i32>} : memref<72x128xf32, #tpu.memory_space<vmem>>, vector<1x128xf32>,
    %cst_26 = arith.constant 0.000000e+00 : f32
    %22 = vector.broadcast %cst_26 : f32 to vector<1x128xf32>
    %c53 = arith.constant 53 : index
    %c0_27 = arith.constant 0 : index
    %23 = vector.load %arg10[%c53, %c0_27] : memref<72x128xf32, #tpu.memory_space<vmem>>, vector<1x128xf32>
    tpu.vector_store %arg10[%c53, %c0_27], %22 {strides = array<i32>} : memref<72x128xf32, #tpu.memory_space<vmem>>, vector<1x128xf32>,
    %c2 = arith.constant 2 : index
    %c0_28 = arith.constant 0 : index
    %c0_29 = arith.constant 0 : index
    %24 = vector.load %arg1[%c2, %c0_28, %c0_29] : memref<4x16x64xf32, #tpu.memory_space<vmem>>, vector<1x16x64xf32>
    %25 = vector.shape_cast %24 : vector<1x16x64xf32> to vector<16x64xf32>
    %c37 = arith.constant 37 : index
    %c0_30 = arith.constant 0 : index
    %26 = vector.load %arg10[%c37, %c0_30] : memref<72x128xf32, #tpu.memory_space<vmem>>, vector<16x64xf32>
    tpu.vector_store %arg10[%c37, %c0_30], %25 {strides = array<i32>} : memref<72x128xf32, #tpu.memory_space<vmem>>, vector<16x64xf32>,
    %c2_31 = arith.constant 2 : index
    %c0_32 = arith.constant 0 : index
    %c0_33 = arith.constant 0 : index
    %27 = vector.load %arg2[%c2_31, %c0_32, %c0_33] : memref<4x16x64xf32, #tpu.memory_space<vmem>>, vector<1x16x64xf32>
    %28 = vector.shape_cast %27 : vector<1x16x64xf32> to vector<16x64xf32>
    %c37_34 = arith.constant 37 : index
    %c64_35 = arith.constant 64 : index
    %29 = vector.load %arg10[%c37_34, %c64_35] : memref<72x128xf32, #tpu.memory_space<vmem>>, vector<16x64xf32>
    tpu.vector_store %arg10[%c37_34, %c64_35], %28 {strides = array<i32>} : memref<72x128xf32, #tpu.memory_space<vmem>>, vector<16x64xf32>,
    %cst_36 = arith.constant 0.000000e+00 : f32
    %30 = vector.broadcast %cst_36 : f32 to vector<1x128xf32>
    %c54 = arith.constant 54 : index
    %c0_37 = arith.constant 0 : index
    %31 = vector.load %arg10[%c54, %c0_37] : memref<72x128xf32, #tpu.memory_space<vmem>>, vector<1x128xf32>
    tpu.vector_store %arg10[%c54, %c0_37], %30 {strides = array<i32>} : memref<72x128xf32, #tpu.memory_space<vmem>>, vector<1x128xf32>,
    %cst_38 = arith.constant 0.000000e+00 : f32
    %32 = vector.broadcast %cst_38 : f32 to vector<1x128xf32>
    %c71 = arith.constant 71 : index
    %c0_39 = arith.constant 0 : index
    %33 = vector.load %arg10[%c71, %c0_39] : memref<72x128xf32, #tpu.memory_space<vmem>>, vector<1x128xf32>
    tpu.vector_store %arg10[%c71, %c0_39], %32 {strides = array<i32>} : memref<72x128xf32, #tpu.memory_space<vmem>>, vector<1x128xf32>,
    %c3 = arith.constant 3 : index
    %c0_40 = arith.constant 0 : index
    %c0_41 = arith.constant 0 : index
    %34 = vector.load %arg1[%c3, %c0_40, %c0_41] : memref<4x16x64xf32, #tpu.memory_space<vmem>>, vector<1x16x64xf32>
    %35 = vector.shape_cast %34 : vector<1x16x64xf32> to vector<16x64xf32>
    %c55 = arith.constant 55 : index
    %c0_42 = arith.constant 0 : index
    %36 = vector.load %arg10[%c55, %c0_42] : memref<72x128xf32, #tpu.memory_space<vmem>>, vector<16x64xf32>
    tpu.vector_store %arg10[%c55, %c0_42], %35 {strides = array<i32>} : memref<72x128xf32, #tpu.memory_space<vmem>>, vector<16x64xf32>,
    %c3_43 = arith.constant 3 : index
    %c0_44 = arith.constant 0 : index
    %c0_45 = arith.constant 0 : index
    %37 = vector.load %arg2[%c3_43, %c0_44, %c0_45] : memref<4x16x64xf32, #tpu.memory_space<vmem>>, vector<1x16x64xf32>
    %38 = vector.shape_cast %37 : vector<1x16x64xf32> to vector<16x64xf32>
    %c55_46 = arith.constant 55 : index
    %c64_47 = arith.constant 64 : index
    %39 = vector.load %arg10[%c55_46, %c64_47] : memref<72x128xf32, #tpu.memory_space<vmem>>, vector<16x64xf32>
    tpu.vector_store %arg10[%c55_46, %c64_47], %38 {strides = array<i32>} : memref<72x128xf32, #tpu.memory_space<vmem>>, vector<16x64xf32>,
    %c0_48 = arith.constant 0 : index
    %c0_49 = arith.constant 0 : index
    %40 = vector.load %arg10[%c0_48, %c0_49] : memref<72x128xf32, #tpu.memory_space<vmem>>, vector<72x128xf32>
    %41 = arith.truncf %40 : vector<72x128xf32> to vector<72x128xbf16>
    %cst_50 = arith.constant 0.000000e+00 : f32
    %42 = vector.broadcast %cst_50 : f32 to vector<70x128xf32>
    %c0_51 = arith.constant 0 : index
    %c0_52 = arith.constant 0 : index
    %c0_53 = arith.constant 0 : index
    %43 = vector.load %arg3[%c0_51, %c0_52, %c0_53] : memref<3x128x128xbf16, #tpu.memory_space<vmem>>, vector<1x128x128xbf16>
    %44 = vector.shape_cast %43 : vector<1x128x128xbf16> to vector<128x128xbf16>
    %cst_54 = arith.constant dense<0.000000e+00> : vector<72x128xf32>
    %45 = tpu.matmul %41, %44, %cst_54 {dimension_numbers = #tpu.dot_dimension_numbers<[1], [0], [0], [1], [0, 0, 1, 1], [], []>} : vector<72x128xbf16>, vector<128x128xbf16>, vector<72x128xf32> -> vector<72x128xf32>
    %46 = vector.extract_strided_slice %45 {offsets = [0, 0], sizes = [70, 128], strides = [1, 1]} : vector<72x128xf32> to vector<70x128xf32>
    %47 = arith.addf %42, %46 : vector<70x128xf32>
    %c1_55 = arith.constant 1 : index
    %c0_56 = arith.constant 0 : index
    %c0_57 = arith.constant 0 : index
    %48 = vector.load %arg3[%c1_55, %c0_56, %c0_57] : memref<3x128x128xbf16, #tpu.memory_space<vmem>>, vector<1x128x128xbf16>
    %49 = vector.shape_cast %48 : vector<1x128x128xbf16> to vector<128x128xbf16>
    %cst_58 = arith.constant dense<0.000000e+00> : vector<72x128xf32>
    %50 = tpu.matmul %41, %49, %cst_58 {dimension_numbers = #tpu.dot_dimension_numbers<[1], [0], [0], [1], [0, 0, 1, 1], [], []>} : vector<72x128xbf16>, vector<128x128xbf16>, vector<72x128xf32> -> vector<72x128xf32>
    %51 = vector.extract_strided_slice %50 {offsets = [1, 0], sizes = [70, 128], strides = [1, 1]} : vector<72x128xf32> to vector<70x128xf32>
    %52 = arith.addf %47, %51 : vector<70x128xf32>
    %c2_59 = arith.constant 2 : index
    %c0_60 = arith.constant 0 : index
    %c0_61 = arith.constant 0 : index
    %53 = vector.load %arg3[%c2_59, %c0_60, %c0_61] : memref<3x128x128xbf16, #tpu.memory_space<vmem>>, vector<1x128x128xbf16>
    %54 = vector.shape_cast %53 : vector<1x128x128xbf16> to vector<128x128xbf16>
    %cst_62 = arith.constant dense<0.000000e+00> : vector<72x128xf32>
    %55 = tpu.matmul %41, %54, %cst_62 {dimension_numbers = #tpu.dot_dimension_numbers<[1], [0], [0], [1], [0, 0, 1, 1], [], []>} : vector<72x128xbf16>, vector<128x128xbf16>, vector<72x128xf32> -> vector<72x128xf32>
    %56 = vector.extract_strided_slice %55 {offsets = [2, 0], sizes = [70, 128], strides = [1, 1]} : vector<72x128xf32> to vector<70x128xf32>
    %57 = arith.addf %52, %56 : vector<70x128xf32>
    %c0_63 = arith.constant 0 : index
    %c0_64 = arith.constant 0 : index
    %58 = vector.load %arg5[%c0_63, %c0_64] : memref<1x128xf32, #tpu.memory_space<vmem>>, vector<1x128xf32>
    %59 = vector.broadcast %58 : vector<1x128xf32> to vector<70x128xf32>
    %60 = arith.addf %57, %59 : vector<70x128xf32>
    %61 = arith.negf %60 : vector<70x128xf32>
    %62 = math.exp %61 : vector<70x128xf32>
    %cst_65 = arith.constant 1.000000e+00 : f32
    %63 = vector.broadcast %cst_65 : f32 to vector<70x128xf32>
    %64 = arith.addf %63, %62 : vector<70x128xf32>
    %65 = arith.divf %63, %64 : vector<70x128xf32>
    %66 = arith.mulf %60, %65 : vector<70x128xf32>
    %c1_66 = arith.constant 1 : index
    %c0_67 = arith.constant 0 : index
    %67 = vector.load %arg11[%c1_66, %c0_67] : memref<72x128xf32, #tpu.memory_space<vmem>>, vector<70x128xf32>
    tpu.vector_store %arg11[%c1_66, %c0_67], %66 {strides = array<i32>} : memref<72x128xf32, #tpu.memory_space<vmem>>, vector<70x128xf32>,
    %cst_68 = arith.constant 0.000000e+00 : f32
    %68 = vector.broadcast %cst_68 : f32 to vector<1x128xf32>
    %c0_69 = arith.constant 0 : index
    %c0_70 = arith.constant 0 : index
    %69 = vector.load %arg11[%c0_69, %c0_70] : memref<72x128xf32, #tpu.memory_space<vmem>>, vector<1x128xf32>
    tpu.vector_store %arg11[%c0_69, %c0_70], %68 {strides = array<i32>} : memref<72x128xf32, #tpu.memory_space<vmem>>, vector<1x128xf32>,
    %cst_71 = arith.constant 0.000000e+00 : f32
    %70 = vector.broadcast %cst_71 : f32 to vector<1x128xf32>
    %c17_72 = arith.constant 17 : index
    %c0_73 = arith.constant 0 : index
    %71 = vector.load %arg11[%c17_72, %c0_73] : memref<72x128xf32, #tpu.memory_space<vmem>>, vector<1x128xf32>
    tpu.vector_store %arg11[%c17_72, %c0_73], %70 {strides = array<i32>} : memref<72x128xf32, #tpu.memory_space<vmem>>, vector<1x128xf32>,
    %cst_74 = arith.constant 0.000000e+00 : f32
    %72 = vector.broadcast %cst_74 : f32 to vector<1x128xf32>
    %c18_75 = arith.constant 18 : index
    %c0_76 = arith.constant 0 : index
    %73 = vector.load %arg11[%c18_75, %c0_76] : memref<72x128xf32, #tpu.memory_space<vmem>>, vector<1x128xf32>
    tpu.vector_store %arg11[%c18_75, %c0_76], %72 {strides = array<i32>} : memref<72x128xf32, #tpu.memory_space<vmem>>, vector<1x128xf32>,
    %cst_77 = arith.constant 0.000000e+00 : f32
    %74 = vector.broadcast %cst_77 : f32 to vector<1x128xf32>
    %c35_78 = arith.constant 35 : index
    %c0_79 = arith.constant 0 : index
    %75 = vector.load %arg11[%c35_78, %c0_79] : memref<72x128xf32, #tpu.memory_space<vmem>>, vector<1x128xf32>
    tpu.vector_store %arg11[%c35_78, %c0_79], %74 {strides = array<i32>} : memref<72x128xf32, #tpu.memory_space<vmem>>, vector<1x128xf32>,
    %cst_80 = arith.constant 0.000000e+00 : f32
    %76 = vector.broadcast %cst_80 : f32 to vector<1x128xf32>
    %c36_81 = arith.constant 36 : index
    %c0_82 = arith.constant 0 : index
    %77 = vector.load %arg11[%c36_81, %c0_82] : memref<72x128xf32, #tpu.memory_space<vmem>>, vector<1x128xf32>
    tpu.vector_store %arg11[%c36_81, %c0_82], %76 {strides = array<i32>} : memref<72x128xf32, #tpu.memory_space<vmem>>, vector<1x128xf32>,
    %cst_83 = arith.constant 0.000000e+00 : f32
    %78 = vector.broadcast %cst_83 : f32 to vector<1x128xf32>
    %c53_84 = arith.constant 53 : index
    %c0_85 = arith.constant 0 : index
    %79 = vector.load %arg11[%c53_84, %c0_85] : memref<72x128xf32, #tpu.memory_space<vmem>>, vector<1x128xf32>
    tpu.vector_store %arg11[%c53_84, %c0_85], %78 {strides = array<i32>} : memref<72x128xf32, #tpu.memory_space<vmem>>, vector<1x128xf32>,
    %cst_86 = arith.constant 0.000000e+00 : f32
    %80 = vector.broadcast %cst_86 : f32 to vector<1x128xf32>
    %c54_87 = arith.constant 54 : index
    %c0_88 = arith.constant 0 : index
    %81 = vector.load %arg11[%c54_87, %c0_88] : memref<72x128xf32, #tpu.memory_space<vmem>>, vector<1x128xf32>
    tpu.vector_store %arg11[%c54_87, %c0_88], %80 {strides = array<i32>} : memref<72x128xf32, #tpu.memory_space<vmem>>, vector<1x128xf32>,
    %cst_89 = arith.constant 0.000000e+00 : f32
    %82 = vector.broadcast %cst_89 : f32 to vector<1x128xf32>
    %c71_90 = arith.constant 71 : index
    %c0_91 = arith.constant 0 : index
    %83 = vector.load %arg11[%c71_90, %c0_91] : memref<72x128xf32, #tpu.memory_space<vmem>>, vector<1x128xf32>
    tpu.vector_store %arg11[%c71_90, %c0_91], %82 {strides = array<i32>} : memref<72x128xf32, #tpu.memory_space<vmem>>, vector<1x128xf32>,
    %c0_92 = arith.constant 0 : index
    %c0_93 = arith.constant 0 : index
    %84 = vector.load %arg11[%c0_92, %c0_93] : memref<72x128xf32, #tpu.memory_space<vmem>>, vector<72x128xf32>
    %85 = arith.truncf %84 : vector<72x128xf32> to vector<72x128xbf16>
    %cst_94 = arith.constant 0.000000e+00 : f32
    %86 = vector.broadcast %cst_94 : f32 to vector<70x128xf32>
    %c0_95 = arith.constant 0 : index
    %c0_96 = arith.constant 0 : index
    %c0_97 = arith.constant 0 : index
    %87 = vector.load %arg4[%c0_95, %c0_96, %c0_97] : memref<3x128x128xbf16, #tpu.memory_space<vmem>>, vector<1x128x128xbf16>
    %88 = vector.shape_cast %87 : vector<1x128x128xbf16> to vector<128x128xbf16>
    %cst_98 = arith.constant dense<0.000000e+00> : vector<72x128xf32>
    %89 = tpu.matmul %85, %88, %cst_98 {dimension_numbers = #tpu.dot_dimension_numbers<[1], [0], [0], [1], [0, 0, 1, 1], [], []>} : vector<72x128xbf16>, vector<128x128xbf16>, vector<72x128xf32> -> vector<72x128xf32>
    %90 = vector.extract_strided_slice %89 {offsets = [0, 0], sizes = [70, 128], strides = [1, 1]} : vector<72x128xf32> to vector<70x128xf32>
    %91 = arith.addf %86, %90 : vector<70x128xf32>
    %c1_99 = arith.constant 1 : index
    %c0_100 = arith.constant 0 : index
    %c0_101 = arith.constant 0 : index
    %92 = vector.load %arg4[%c1_99, %c0_100, %c0_101] : memref<3x128x128xbf16, #tpu.memory_space<vmem>>, vector<1x128x128xbf16>
    %93 = vector.shape_cast %92 : vector<1x128x128xbf16> to vector<128x128xbf16>
    %cst_102 = arith.constant dense<0.000000e+00> : vector<72x128xf32>
    %94 = tpu.matmul %85, %93, %cst_102 {dimension_numbers = #tpu.dot_dimension_numbers<[1], [0], [0], [1], [0, 0, 1, 1], [], []>} : vector<72x128xbf16>, vector<128x128xbf16>, vector<72x128xf32> -> vector<72x128xf32>
    %95 = vector.extract_strided_slice %94 {offsets = [1, 0], sizes = [70, 128], strides = [1, 1]} : vector<72x128xf32> to vector<70x128xf32>
    %96 = arith.addf %91, %95 : vector<70x128xf32>
    %c2_103 = arith.constant 2 : index
    %c0_104 = arith.constant 0 : index
    %c0_105 = arith.constant 0 : index
    %97 = vector.load %arg4[%c2_103, %c0_104, %c0_105] : memref<3x128x128xbf16, #tpu.memory_space<vmem>>, vector<1x128x128xbf16>
    %98 = vector.shape_cast %97 : vector<1x128x128xbf16> to vector<128x128xbf16>
    %cst_106 = arith.constant dense<0.000000e+00> : vector<72x128xf32>
    %99 = tpu.matmul %85, %98, %cst_106 {dimension_numbers = #tpu.dot_dimension_numbers<[1], [0], [0], [1], [0, 0, 1, 1], [], []>} : vector<72x128xbf16>, vector<128x128xbf16>, vector<72x128xf32> -> vector<72x128xf32>
    %100 = vector.extract_strided_slice %99 {offsets = [2, 0], sizes = [70, 128], strides = [1, 1]} : vector<72x128xf32> to vector<70x128xf32>
    %101 = arith.addf %96, %100 : vector<70x128xf32>
    %c0_107 = arith.constant 0 : index
    %c0_108 = arith.constant 0 : index
    %102 = vector.load %arg6[%c0_107, %c0_108] : memref<1x128xf32, #tpu.memory_space<vmem>>, vector<1x128xf32>
    %103 = vector.broadcast %102 : vector<1x128xf32> to vector<70x128xf32>
    %104 = arith.addf %101, %103 : vector<70x128xf32>
    %105 = arith.negf %104 : vector<70x128xf32>
    %106 = math.exp %105 : vector<70x128xf32>
    %cst_109 = arith.constant 1.000000e+00 : f32
    %107 = vector.broadcast %cst_109 : f32 to vector<70x128xf32>
    %108 = arith.addf %107, %106 : vector<70x128xf32>
    %109 = arith.divf %107, %108 : vector<70x128xf32>
    %110 = arith.mulf %104, %109 : vector<70x128xf32>
    %111 = arith.truncf %110 : vector<70x128xf32> to vector<70x128xbf16>
    %c0_110 = arith.constant 0 : index
    %c0_111 = arith.constant 0 : index
    %112 = vector.load %arg7[%c0_110, %c0_111] : memref<128x256xbf16, #tpu.memory_space<vmem>>, vector<128x256xbf16>
    %cst_112 = arith.constant dense<0.000000e+00> : vector<70x256xf32>
    %113 = tpu.matmul %111, %112, %cst_112 {dimension_numbers = #tpu.dot_dimension_numbers<[1], [0], [0], [1], [0, 0, 1, 1], [], []>} : vector<70x128xbf16>, vector<128x256xbf16>, vector<70x256xf32> -> vector<70x256xf32>
    %c0_113 = arith.constant 0 : index
    %c0_114 = arith.constant 0 : index
    %114 = vector.load %arg8[%c0_113, %c0_114] : memref<128x70xbf16, #tpu.memory_space<vmem>>, vector<128x70xbf16>
    %115 = arith.truncf %113 : vector<70x256xf32> to vector<70x256xbf16>
    %cst_115 = arith.constant dense<0.000000e+00> : vector<128x256xf32>
    %116 = tpu.matmul %114, %115, %cst_115 {dimension_numbers = #tpu.dot_dimension_numbers<[1], [0], [0], [1], [0, 0, 1, 1], [], []>} : vector<128x70xbf16>, vector<70x256xbf16>, vector<128x256xf32> -> vector<128x256xf32>
    %117 = vector.extract_strided_slice %116 {offsets = [0, 0], sizes = [32, 256], strides = [1, 1]} : vector<128x256xf32> to vector<32x256xf32>
    %c0_116 = arith.constant 0 : index
    %c0_117 = arith.constant 0 : index
    %c0_118 = arith.constant 0 : index
    %118 = vector.load %arg9[%c0_116, %c0_117, %c0_118] : memref<4x32x256xf32, #tpu.memory_space<vmem>>, vector<1x32x256xf32>
    %119 = vector.shape_cast %118 : vector<1x32x256xf32> to vector<32x256xf32>
    %120 = vector.shape_cast %117 : vector<32x256xf32> to vector<1x32x256xf32>
    tpu.vector_store %arg9[%c0_116, %c0_117, %c0_118], %120 {strides = array<i32>} : memref<4x32x256xf32, #tpu.memory_space<vmem>>, vector<1x32x256xf32>,
    %121 = vector.extract_strided_slice %116 {offsets = [32, 0], sizes = [32, 256], strides = [1, 1]} : vector<128x256xf32> to vector<32x256xf32>
    %c1_119 = arith.constant 1 : index
    %c0_120 = arith.constant 0 : index
    %c0_121 = arith.constant 0 : index
    %122 = vector.load %arg9[%c1_119, %c0_120, %c0_121] : memref<4x32x256xf32, #tpu.memory_space<vmem>>, vector<1x32x256xf32>
    %123 = vector.shape_cast %122 : vector<1x32x256xf32> to vector<32x256xf32>
    %124 = vector.shape_cast %121 : vector<32x256xf32> to vector<1x32x256xf32>
    tpu.vector_store %arg9[%c1_119, %c0_120, %c0_121], %124 {strides = array<i32>} : memref<4x32x256xf32, #tpu.memory_space<vmem>>, vector<1x32x256xf32>,
    %125 = vector.extract_strided_slice %116 {offsets = [64, 0], sizes = [32, 256], strides = [1, 1]} : vector<128x256xf32> to vector<32x256xf32>
    %c2_122 = arith.constant 2 : index
    %c0_123 = arith.constant 0 : index
    %c0_124 = arith.constant 0 : index
    %126 = vector.load %arg9[%c2_122, %c0_123, %c0_124] : memref<4x32x256xf32, #tpu.memory_space<vmem>>, vector<1x32x256xf32>
    %127 = vector.shape_cast %126 : vector<1x32x256xf32> to vector<32x256xf32>
    %128 = vector.shape_cast %125 : vector<32x256xf32> to vector<1x32x256xf32>
    tpu.vector_store %arg9[%c2_122, %c0_123, %c0_124], %128 {strides = array<i32>} : memref<4x32x256xf32, #tpu.memory_space<vmem>>, vector<1x32x256xf32>,
    %129 = vector.extract_strided_slice %116 {offsets = [96, 0], sizes = [32, 256], strides = [1, 1]} : vector<128x256xf32> to vector<32x256xf32>
    %c3_125 = arith.constant 3 : index
    %c0_126 = arith.constant 0 : index
    %c0_127 = arith.constant 0 : index
    %130 = vector.load %arg9[%c3_125, %c0_126, %c0_127] : memref<4x32x256xf32, #tpu.memory_space<vmem>>, vector<1x32x256xf32>
    %131 = vector.shape_cast %130 : vector<1x32x256xf32> to vector<32x256xf32>
    %132 = vector.shape_cast %129 : vector<32x256xf32> to vector<1x32x256xf32>
    tpu.vector_store %arg9[%c3_125, %c0_126, %c0_127], %132 {strides = array<i32>} : memref<4x32x256xf32, #tpu.memory_space<vmem>>, vector<1x32x256xf32>,
    return
  }
  func.func @transform_0(%arg0: i32) -> (i32, i32, i32) {
    %c0_i32 = arith.constant 0 : i32
    %c0_i32_0 = arith.constant 0 : i32
    %c0_i32_1 = arith.constant 0 : i32
    return %arg0, %c0_i32, %c0_i32_0 : i32, i32, i32
  }
  func.func @transform_1(%arg0: i32) -> (i32, i32, i32) {
    %c0_i32 = arith.constant 0 : i32
    %c0_i32_0 = arith.constant 0 : i32
    %c0_i32_1 = arith.constant 0 : i32
    return %arg0, %c0_i32, %c0_i32_0 : i32, i32, i32
  }
  func.func @transform_2(%arg0: i32) -> (i32, i32, i32) {
    %c0_i32 = arith.constant 0 : i32
    %c0_i32_0 = arith.constant 0 : i32
    %c0_i32_1 = arith.constant 0 : i32
    %c0_i32_2 = arith.constant 0 : i32
    return %c0_i32, %c0_i32_0, %c0_i32_1 : i32, i32, i32
  }
  func.func @transform_3(%arg0: i32) -> (i32, i32, i32) {
    %c0_i32 = arith.constant 0 : i32
    %c0_i32_0 = arith.constant 0 : i32
    %c0_i32_1 = arith.constant 0 : i32
    %c0_i32_2 = arith.constant 0 : i32
    return %c0_i32, %c0_i32_0, %c0_i32_1 : i32, i32, i32
  }
  func.func @transform_4(%arg0: i32) -> (i32, i32) {
    %c0_i32 = arith.constant 0 : i32
    %c0_i32_0 = arith.constant 0 : i32
    %c0_i32_1 = arith.constant 0 : i32
    return %c0_i32, %c0_i32_0 : i32, i32
  }
  func.func @transform_5(%arg0: i32) -> (i32, i32) {
    %c0_i32 = arith.constant 0 : i32
    %c0_i32_0 = arith.constant 0 : i32
    %c0_i32_1 = arith.constant 0 : i32
    return %c0_i32, %c0_i32_0 : i32, i32
  }
  func.func @transform_6(%arg0: i32) -> (i32, i32) {
    %c0_i32 = arith.constant 0 : i32
    %c0_i32_0 = arith.constant 0 : i32
    %c0_i32_1 = arith.constant 0 : i32
    return %c0_i32, %c0_i32_0 : i32, i32
  }
  func.func @transform_7(%arg0: i32) -> (i32, i32) {
    %c0_i32 = arith.constant 0 : i32
    %c0_i32_0 = arith.constant 0 : i32
    %c0_i32_1 = arith.constant 0 : i32
    return %c0_i32, %c0_i32_0 : i32, i32
  }
  func.func @transform_8(%arg0: i32) -> (i32, i32, i32) {
    %c0_i32 = arith.constant 0 : i32
    %c0_i32_0 = arith.constant 0 : i32
    %c0_i32_1 = arith.constant 0 : i32
    return %arg0, %c0_i32, %c0_i32_0 : i32, i32, i32
  }
}

</mosaic_0001>

<bundles_post_ra>
// kernel: tpu_custom_call.1
= control target key start
LH: loop header
LB: loop body
LE: loop exit
PB: predicated region body
PF: predicated region fallthrough
CT: control target
= control target key end

     0   :  { %s3967_s0 = inlined_call_operand.hbm [shape: f32[8,16,64], index: 0, kind: input, shape index: {}]   ;;  %s3968_s1 = inlined_call_operand.hbm [shape: f32[8,16,64], index: 1, kind: input, shape index: {}]   ;;  %s3969_s2 = inlined_call_operand.hbm [shape: bf16[3,128,128], index: 2, kind: input, shape index: {}]   ;;  %s3970_s3 = inlined_call_operand.hbm [shape: bf16[3,128,128], index: 3, kind: input, shape index: {}]   ;;  %s3971_s4 = inlined_call_operand.vmem [shape: f32[1,128], index: 4, kind: input, shape index: {}]   ;;  %s3972_s5 = inlined_call_operand.vmem [shape: f32[1,128], index: 5, kind: input, shape index: {}]   ;;  %s3973_s6 = inlined_call_operand.hbm [shape: bf16[128,256], index: 6, kind: input, shape index: {}]   ;;  %s3974_s7 = inlined_call_operand.vmem [shape: bf16[128,70], index: 7, kind: input, shape index: {}]   ;;  %s3975_s8 = inlined_call_operand.hbm [shape: f32[8,32,256], index: 8, kind: output, shape index: {}]  }
   0x1   :  { %3986 = sst [smem:[#allocation22_spill]] %s3967_s0 }
   0x2   :  { %3987 = sst [smem:[#allocation23_spill]] %s3969_s2 }
   0x3   :  { %3988 = sst [smem:[#allocation24_spill]] %s3970_s3 }
   0x4   :  { %3989 = sst [smem:[#allocation25_spill]] %s3973_s6 }
   0x5   :  { %13 = vsyncpa [#allocation5], 0 }
   0x6   :  { %15 = vsyncpa [#allocation5 + $0x1], 0 }
   0x7   :  { %16 = vsyncpa [#allocation8], 0 }
   0x8   :  { %18 = vsyncpa [#allocation8 + $0x1], 0 }
   0x9   :  { %19 = vsyncpa [#allocation11], 0 }
   0xa   :  { %20 = vsyncpa [#allocation6], 0 }
   0xb   :  { %22 = vsyncpa [#allocation6 + $0x1], 0  ;;  %s3270_s27 = smov 0   ;;  %s3272_s28 = smov 0  }
   0xc   :  { %s3274_s29 = smov 0   ;;  %s3276_s30 = smov 0  }
   0xd LB: > { %3990 = sst [smem:[#allocation19_spill]] %s3203_s29  ;;  %s3291_s9 = sadd.s32 4294967295, %s3207_s30   ;;  %s3207_s30 = sphi %s3276_s30, %s4014_s30   ;;  %s3203_s29 = sphi %s3274_s29, %s4016_s29   ;;  %s3199_s28 = sphi %s3272_s28, %s4018_s28   ;;  %s3195_s27 = sphi %s3270_s27, %s4017_s27  }
   0xe   : > { %s2279_s10 = sadd.s32 4294967294, %s3207_s30   ;;  %p48_p0 = scmp.ne.s32.totalorder %s3199_s28, %s3195_s27 }
   0xf   : > { %p3976_p1 = scmp.eq.s32.totalorder %s3291_s9, 0  ;;  %p230_p3 = scmp.eq.s32.totalorder %s2279_s10, 1 }
  0x10   : > { %p2280_p5 = scmp.ge.s32.totalorder %s3207_s30, 1  ;;  %p237_p7 = scmp.lt.s32.totalorder %s3207_s30, 3 }
  0x11   : > { %p3300_p4 = por %p3976_p1, %p48_p0  ;;  %p3305_p6 = por %p230_p3, %p48_p0 }
  0x12   : > { %p3310_p8 = pnand %p2280_p5, %p237_p7  ;;  %s3209_s14 = smov [#allocation9]  }
  0x13   : > { %s3991_s11 = scalar_select %p3300_p4, 1, 0 }
  0x14   : > { %s3992_s12 = scalar_select %p3305_p6, 1, 0 }
  0x15   : > { %s249_s15 = sshll.u32 %s3209_s14, 4  ;;  %p2771_p9 = pneg %p3310_p8  ;;  %s250_s15 = int_to_ptr.vmem [resolvable:$true] %s249_s15 }
  0x16   : > { %s3210_s17 = smov [#allocation10]   ;;  %s3211_s19 = smov [#allocation12]  }
  0x17   : > { %p3319_p11 = pnand %p2771_p9, %p3976_p1  ;;  %s262_s18 = sshll.u32 %s3210_s17, 4  ;;  %s263_s18 = int_to_ptr.vmem [resolvable:$true] %s262_s18 }
  0x18   : > { %s281_s20 = sshll.u32 %s3211_s19, 4  ;;  %s3008_s21 = scalar_lea.vmem %s250_s15, 3072  ;;  %s282_s20 = int_to_ptr.vmem [resolvable:$true] %s281_s20 }
  0x19   : > { %p2999_p12 = pneg %p3319_p11  ;;  %p3009_p13 = scmp.ne.s32.totalorder %s250_s15, %s3008_s21 }
  0x1a   : > { %p3016_p5 = scmp.lt.s32.totalorder %s250_s15, %s250_s15  ;;  %p3017_p7 = scmp.lt.s32.totalorder %s3008_s21, %s3008_s21 }
  0x1b   : > { %p3011_p0 = pnand %p3009_p13, %p2999_p12 }
  0x1c   : > { %p3018_p9 = por %p3017_p7, %p3016_p5 }
  0x1d   : > { %p3012_p3 = pneg %p3011_p0 }
  0x1f   : > { %p3019_p10 = pnand %p3018_p9, %p3012_p3 }
  0x21   : > { %3022 = shalt.err (!%p3019_p10)
}
  0x22   : > { %s3212_s22 = smov 64   ;;  %s3213_s23 = smov 4  }
  0x23   : > { %s3995_s2 = sld [smem:[#allocation23_spill]]  ;;  %s3034_s26 = scalar_lea.vmem %s263_s18, 3072 }
  0x24   : > { %p3035_p1 = scmp.ne.s32.totalorder %s263_s18, %s3034_s26  ;;  %p3042_p2 = scmp.lt.s32.totalorder %s263_s18, %s263_s18 }
  0x25   : > { %p3043_p6 = scmp.lt.s32.totalorder %s3034_s26, %s3034_s26 }
  0x26   : > { %p3037_p13 = pnand %p3035_p1, %p2999_p12 }
  0x27   : > { %p3044_p5 = por %p3043_p6, %p3042_p2 }
  0x28   : > { %p3038_p0 = pneg %p3037_p13 }
  0x29   : > { %2774 = dma.hbm_to_vmem [thread:$0]  (!%p3319_p11), %s3995_s2, 3072, %s250_s15, [#allocation8], %s3212_s22, %s3212_s22, %s3213_s23  }
  0x2a   : > { %p3045_p3 = pnand %p3044_p5, %p3038_p0 }
  0x2c   : > { %3048 = shalt.err (!%p3045_p3)
}
  0x2d   : > { %s3996_s3 = sld [smem:[#allocation24_spill]]  ;;  %s3060_s15 = scalar_lea.vmem %s282_s20, 2048 }
  0x2e   : > { %p3061_p10 = scmp.ne.s32.totalorder %s282_s20, %s3060_s15  ;;  %p3068_p9 = scmp.lt.s32.totalorder %s282_s20, %s282_s20 }
  0x2f   : > { %p3069_p13 = scmp.lt.s32.totalorder %s3060_s15, %s3060_s15 }
  0x30   : > { %p3063_p7 = pnand %p3061_p10, %p2999_p12 }
  0x31   : > { %p3070_p4 = por %p3069_p13, %p3068_p9 }
  0x32   : > { %p3064_p1 = pneg %p3063_p7 }
  0x33   : > { %2777 = dma.hbm_to_vmem [thread:$0]  (!%p3319_p11), %s3996_s3, 3072, %s263_s18, [#allocation11], %s3212_s22, %s3212_s22, %s3213_s23  }
  0x34   : > { %p3071_p2 = pnand %p3070_p4, %p3064_p1 }
  0x36   : > { %3074 = shalt.err (!%p3071_p2)
}
  0x37   : > { %s3978_s17 = smov 128   ;;  %s3980_s18 = smov 8  }
  0x38   : > { %s3997_s6 = sld [smem:[#allocation25_spill]]  ;;  %s3353_s22 = sadd.s32 1, %s3207_s30  }
  0x39   : > { %3998 = sst [smem:[#allocation20_spill]] %s3353_s22  ;;  %s32_s23 = ssub.s32 %s3207_s30, %s3353_s22 }
  0x3a   : > { %s35_s24 = sadd.s32 1, %s3203_s29  ;;  %p33_p4 = scmp.eq.s32.totalorder %s32_s23, 0 }
  0x3b   : > { %p42_p6 = scmp.ne.s32.totalorder %s3203_s29, %s3199_s28  ;;  %p43_p12 = scmp.eq.s32.totalorder %s3207_s30, 0 }
  0x3c   : > { %p2795_p0 = scmp.lt.s32.totalorder %s3207_s30, 2  ;;  %p4000_p3 = scmp.eq.s32.totalorder %s3291_s9, 1 }
  0x3d   : > { %s3363_s25 = scalar_select %p33_p4, %s3203_s29, %s35_s24  }
  0x3e   : > { %2780 = dma.hbm_to_vmem [thread:$0]  (!%p3319_p11), %s3997_s6, 2048, %s282_s20, [#allocation11], %s3978_s17, %s3978_s17, %s3980_s18  }
  0x3f   : > { %3999 = sst [smem:[#allocation21_spill]] %s3363_s25  ;;  %p44_p5 = por %p43_p12, %p42_p6 }
  0x40   : > { %p3367_p10 = por %p4000_p3, %p42_p6  ;;  %s298_s26 = sand.u32 1, %s3203_s29  }
  0x41   : > { %s2444_s10 = sshll.u32 %s3207_s30, 10  ;;  %s3373_s20 = sshll.u32 %s298_s26, 6 }
  0x42   : > { %s4001_s16 = scalar_select %p3367_p10, 1, 0 }
  0x43   : > { %s4002_s0 = sld [smem:[#allocation22_spill]]  ;;  %s302_s21 = scalar_lea.vmem [#allocation4], %s3373_s20 }
  0x44   : > { %s310_s23 = sshll.u32 %s302_s21, 4  ;;  %p3381_p11 = pnand %p2795_p0, %p44_p5  ;;  %s3385_s23 = int_to_ptr.vmem [resolvable:$true] %s310_s23 }
  0x45   : > { %s3390_s14 = scalar_lea.hbm %s3968_s1, %s2444_s10  ;;  %s3392_s15 = scalar_lea.sflag [#allocation5], %s298_s26 }
  0x46   : > { %p3077_p1 = pneg %p3381_p11 }
  0x49   : > { %s3378_s19 = scalar_lea.hbm %s4002_s0, %s2444_s10  ;;  %s3080_s6 = scalar_lea.hbm %s4002_s0, 2048 }
  0x4a   : > { %s3075_s2 = scalar_lea.hbm %s3378_s19, 1024  ;;  %p3081_p2 = scmp.lt.s32.totalorder %s3378_s19, %s4002_s0 }
  0x4b   : > { %p3076_p7 = scmp.ne.s32.totalorder %s3378_s19, %s3075_s2  ;;  %p3082_p4 = scmp.lt.s32.totalorder %s3080_s6, %s3075_s2 }
  0x4d   : > { %p3078_p9 = pnand %p3077_p1, %p3076_p7  ;;  %p3083_p6 = por %p3082_p4, %p3081_p2 }
  0x4f   : > { %p3079_p13 = pneg %p3078_p9 }
  0x51   : > { %p3084_p12 = pnand %p3083_p6, %p3079_p13 }
  0x53   : > { %3087 = shalt.err (!%p3084_p12)
}
  0x54   : > { %s3088_s17 = scalar_lea.vmem %s3385_s23, 1024  ;;  %s3216_s3 = smov [#allocation4]  }
  0x55   : > { %p3089_p0 = scmp.ne.s32.totalorder %s3385_s23, %s3088_s17  ;;  %s3093_s18 = sshll.u32 %s3216_s3, 4  ;;  %s3094_s18 = int_to_ptr.vmem [resolvable:$false] %s3093_s18 }
  0x56   : > { %s3095_s26 = scalar_lea.vmem %s3094_s18, 2048  ;;  %p3096_p7 = scmp.lt.s32.totalorder %s3385_s23, %s3094_s18 }
  0x57   : > { %p3091_p5 = pnand %p3089_p0, %p3077_p1  ;;  %p3097_p9 = scmp.lt.s32.totalorder %s3095_s26, %s3088_s17 }
  0x59   : > { %p3092_p3 = pneg %p3091_p5  ;;  %p3098_p10 = por %p3097_p9, %p3096_p7 }
  0x5b   : > { %p3099_p2 = pnand %p3098_p10, %p3092_p3 }
  0x5d   : > { %3102 = shalt.err (!%p3099_p2)
}
  0x5e   : > { %s4004_s2 = smov 8   ;;  %s4005_s6 = smov 128  }
  0x5f   : > { %2784 = dma.hbm_to_vmem [thread:$0]  (!%p3381_p11), %s3378_s19, 1024, %s3385_s23, %s3392_s15, %s4005_s6, %s4005_s6, %s4004_s2  }
  0x60   : > { %s324_s29 = scalar_lea.vmem [#allocation7], %s3373_s20  ;;  %s320_s10 = sand.u32 1, %s3207_s30  }
  0x61   : > { %s332_s25 = sshll.u32 %s324_s29, 4  ;;  %s321_s21 = scalar_lea.sflag [#allocation8], %s320_s10  ;;  %s3424_s25 = int_to_ptr.vmem [resolvable:$true] %s332_s25 }
  0x62   : > { %s3103_s17 = scalar_lea.hbm %s3390_s14, 1024  ;;  %s3108_s26 = scalar_lea.hbm %s3968_s1, 2048 }
  0x63   : > { %p3104_p10 = scmp.ne.s32.totalorder %s3390_s14, %s3103_s17  ;;  %p3109_p6 = scmp.lt.s32.totalorder %s3390_s14, %s3968_s1 }
  0x64   : > { %p3110_p12 = scmp.lt.s32.totalorder %s3108_s26, %s3103_s17 }
  0x65   : > { %p3106_p13 = pnand %p3104_p10, %p3077_p1 }
  0x66   : > { %p3111_p0 = por %p3110_p12, %p3109_p6 }
  0x67   : > { %p3107_p4 = pneg %p3106_p13 }
  0x69   : > { %p3112_p5 = pnand %p3111_p0, %p3107_p4 }
  0x6b   : > { %3115 = shalt.err (!%p3112_p5)
}
  0x6c   : > { %s3116_s20 = scalar_lea.vmem %s3424_s25, 1024  ;;  %s3217_s19 = smov [#allocation7]  }
  0x6d   : > { %p3117_p3 = scmp.ne.s32.totalorder %s3424_s25, %s3116_s20  ;;  %s3121_s23 = sshll.u32 %s3217_s19, 4  ;;  %s3122_s23 = int_to_ptr.vmem [resolvable:$false] %s3121_s23 }
  0x6e   : > { %s3123_s15 = scalar_lea.vmem %s3122_s23, 2048  ;;  %p3124_p2 = scmp.lt.s32.totalorder %s3424_s25, %s3122_s23 }
  0x6f   : > { %p3119_p7 = pnand %p3117_p3, %p3077_p1  ;;  %p3125_p10 = scmp.lt.s32.totalorder %s3123_s15, %s3116_s20 }
  0x71   : > { %p3120_p9 = pneg %p3119_p7  ;;  %p3126_p13 = por %p3125_p10, %p3124_p2 }
  0x73   : > { %p3127_p6 = pnand %p3126_p13, %p3120_p9 }
  0x75   : > { %3130 = shalt.err (!%p3127_p6)
}
  0x76   : > { %2787 = dma.hbm_to_vmem [thread:$0]  (!%p3381_p11), %s3390_s14, 1024, %s3424_s25, %s321_s21, %s4005_s6, %s4005_s6, %s4004_s2  }
  0x77   : > { %344 = sbr.rel (%p3310_p8) target bundleno = 1354 (0x54a), region = 52  ;;  %s3454_s0 = sand.u32 (!%p3310_p8), 1, %s3199_s28  }
  0x78   : > { %s2294_s22 = sshll.u32 (!%p3310_p8), %s3454_s0, 6  ;;  %s347_s29 = scalar_lea.sflag (!%p3310_p8), [#allocation5], %s3454_s0 }
  0x79   : > { %s3458_s10 = scalar_lea.vmem (!%p3310_p8), [#allocation4], %s2294_s22  ;;  %p4006_p1 = scmp.ne.s32.totalorder (!%p3310_p8), %s3991_s11, 0 }
  0x7c   : > { %3174 = dma.done.wait (%p4006_p1), %s347_s29, 1024  }
  0x7d   : > { %3176 = vsyncadd (%p4006_p1), %s347_s29, 4294966272  ;;  %s355_s24 = sand.u32 1, %s3291_s9   ;;  %s3465_s14 = scalar_lea.vmem [#allocation7], %s2294_s22 }
  0x7e   : > { %s356_s13 = scalar_lea.sflag [#allocation8], %s355_s24 }
  0x7f   : > { %3178 = dma.done.wait (%p4006_p1), %s356_s13, 1024  }
  0x80   : > { %3180 = vsyncadd (%p4006_p1), %s356_s13, 4294966272  ;;  %p4007_p8 = scmp.eq.s32.totalorder %s3291_s9, 0 }
  0x82   : > { %3182 = dma.done.wait (%p4007_p8), [#allocation8], 3072   ;;  %p4008_p11 = pmov %p4007_p8 }
  0x83   : > { %p4009_p4 = pmov %p4007_p8 }
  0x84   : > { %3184 = vsyncadd (%p4008_p11), [#allocation8], 4294964224 }
  0x85   : > { %3186 = dma.done.wait (%p4009_p4), [#allocation11], 5120   ;;  %p4010_p12 = pmov %p4009_p4 }
  0x86   : > { %v3218_v0 = vmov 0.0   ;;  %vm3219_vm0 = vmmov 0   ;;  %v2302_v1 = vld [vmem:[%s3465_s14 + $0x10] sm:$0xff]  ;;  %v420_v2 = vld [vmem:[%s3465_s14] sm:$0xff]  ;;  %s3220_s11 = smov 64   ;;  %v2303_v3 = vld [vmem:[%s3465_s14 + $0x18] sm:$0xff] }
  0x87   : > { %3188 = vsyncadd (%p4010_p12), [#allocation11], 4294962176  ;;  %2527 = vmatprep.subr.bf16.mxu0 %v3218_v0  ;;  %413 = vst [vmem:[#allocation2] sm:$0x1] %v3218_v0  ;;  %2563 = vmatprep.subr.bf16.mxu1 %v3218_v0  ;;  %v421_v4 = vld [vmem:[%s3465_s14 + $0x8] sm:$0xff]  ;;  %v2845_v5 = vld [vmem:[#allocation9 + $0x38] sm:$0xff]  }
  0x88   : > { %414 = vst [vmem:[#allocation2 + $0x11] sm:$0x1] %v3218_v0  ;;  %433 = vst [vmem:[#allocation2 + $0x12] sm:$0x1] %v3218_v0  ;;  %2543 = vmatprep.mubr.msk.bf16.mxu0 %vm3219_vm0, %v3218_v0  ;;  %2579 = vmatprep.mubr.msk.bf16.mxu1 %vm3219_vm0, %v3218_v0  ;;  %v2307_v6 = vld [vmem:[%s3465_s14 + $0x28] sm:$0xff]  ;;  %v2306_v7 = vld [vmem:[%s3465_s14 + $0x20] sm:$0xff] }
  0x89   : > { %434 = vst [vmem:[#allocation2 + $0x23] sm:$0x1] %v3218_v0  ;;  %453 = vst [vmem:[#allocation2 + $0x24] sm:$0x1] %v3218_v0  ;;  %445 = vrot.lane.b32.xlu1 %v2302_v1, %s3220_s11  ;;  %424 = vrot.lane.b32.xlu0 %v420_v2, %s3220_s11  ;;  %v2846_v8 = vld [vmem:[#allocation9 + $0x78] sm:$0xff]   ;;  %v2847_v9 = vld [vmem:[#allocation9 + $0x30] sm:$0xff]  }
  0x8a   : > { %454 = vst [vmem:[#allocation2 + $0x35] sm:$0x1] %v3218_v0  ;;  %473 = vst [vmem:[#allocation2 + $0x36] sm:$0x1] %v3218_v0  ;;  %2528 = vmatpush3.bf16.msra.mxu0 %v2845_v5  ;;  %2564 = vmatpush3.bf16.msra.mxu1 %v2846_v8  ;;  %v2848_v10 = vld [vmem:[#allocation9 + $0x70] sm:$0xff]   ;;  %v2311_v11 = vld [vmem:[%s3465_s14 + $0x38] sm:$0xff] }
  0x8b   : > { %474 = vst [vmem:[#allocation2 + $0x47] sm:$0x1] %v3218_v0  ;;  %1104 = vst [vmem:[#allocation3] sm:$0x1] %v3218_v0  ;;  %2529 = vmatprep.subr.bf16.mxu0 %v3218_v0  ;;  %2565 = vmatprep.subr.bf16.mxu1 %v3218_v0  ;;  %v2310_v12 = vld [vmem:[%s3465_s14 + $0x30] sm:$0xff]  ;;  %v2849_v13 = vld [vmem:[#allocation9 + $0x28] sm:$0xff]  }
  0x8c   : > { %1111 = vst [vmem:[#allocation3 + $0x47] sm:$0x1] %v3218_v0  ;;  %v2850_v14 = vld [vmem:[#allocation9 + $0x68] sm:$0xff]   ;;  %vm417_vm1 = vcmask 523264   ;;  %v2851_v15 = vld [vmem:[#allocation9 + $0x20] sm:$0xff]   ;;  %v2300_v16 = vld [vmem:[%s3458_s10 + $0x10] sm:$0xff] }
  0x8d   : > { %447 = vrot.lane.b32.xlu1 %v2303_v3, %s3220_s11  ;;  %426 = vrot.lane.b32.xlu0 %v421_v4, %s3220_s11  ;;  %438 = vst.msk [vmem:[#allocation2 + $0x13] sm:$0xff] %vm417_vm1, %v2300_v16  ;;  %v415_v17 = vld [vmem:[%s3458_s10] sm:$0xff]  ;;  %v2301_v19 = vld [vmem:[%s3458_s10 + $0x18] sm:$0xff]  ;;  %v2855_v23 = vld [vmem:[#allocation9 + $0x10] sm:$0xff]   ;;  %vm430_vm2 = vcmask 1048064   ;;  %vm798_vm3 = vcmask 1046528  }
  0x8e   : > { %2530 = vmatpush3.bf16.msra.mxu0 %v2847_v9  ;;  %2566 = vmatpush3.bf16.msra.mxu1 %v2848_v10  ;;  %v2852_v18 = vld [vmem:[#allocation9 + $0x60] sm:$0xff]   ;;  %418 = vst.msk [vmem:[#allocation2 + $0x1] sm:$0xff] %vm417_vm1, %v415_v17  ;;  %v416_v20 = vld [vmem:[%s3458_s10 + $0x8] sm:$0xff]  ;;  %439 = vst.msk [vmem:[#allocation2 + $0x1b] sm:$0xff] %vm417_vm1, %v2301_v19  ;;  %vm980_vm4 = vcmask 1045504   ;;  %vm1985_vm5 = vcmask 1042432  }
  0x8f   : > { %2531 = vmatprep.subr.bf16.mxu0 %v3218_v0  ;;  %2567 = vmatprep.subr.bf16.mxu1 %v3218_v0  ;;  %419 = vst.msk [vmem:[#allocation2 + $0x9] sm:$0xff] %vm417_vm1, %v416_v20  ;;  %v2853_v21 = vld [vmem:[#allocation9 + $0x18] sm:$0xff]   ;;  %v2305_v24 = vld [vmem:[%s3458_s10 + $0x28] sm:$0xff]  ;;  %v2304_v25 = vld [vmem:[%s3458_s10 + $0x20] sm:$0xff]  ;;  %vm1960_vm6 = vcmask 572416   ;;  %s2299_s6 = sshll.u32 %s3454_s0, 8 }
  0x90   : > { %v2854_v22 = vld [vmem:[#allocation9 + $0x58] sm:$0xff]   ;;  %459 = vst.msk [vmem:[#allocation2 + $0x2d] sm:$0xff] %vm417_vm1, %v2305_v24  ;;  %458 = vst.msk [vmem:[#allocation2 + $0x25] sm:$0xff] %vm417_vm1, %v2304_v25  ;;  %v2308_v27 = vld [vmem:[%s3458_s10 + $0x30] sm:$0xff]  ;;  %s3883_s25 = scalar_lea.vmem [#allocation13], %s2299_s6  ;;  %s2448_s21 = sshll.u32 %s3291_s9, 12 }
  0x91   : > { %467 = vrot.lane.b32.xlu1 %v2307_v6, %s3220_s11  ;;  %465 = vrot.lane.b32.xlu0 %v2306_v7, %s3220_s11  ;;  %v2309_v26 = vld [vmem:[%s3458_s10 + $0x38] sm:$0xff]  ;;  %v2856_v28 = vld [vmem:[#allocation9 + $0x50] sm:$0xff]   ;;  %478 = vst.msk [vmem:[#allocation2 + $0x37] sm:$0xff] %vm417_vm1, %v2308_v27  ;;  %v2857_v29 = vld [vmem:[#allocation9 + $0x8] sm:$0xff]   ;;  %s2155_s17 = sshll.u32 %s3883_s25, 4  ;;  %s3920_s26 = scalar_lea.hbm %s3975_s8, %s2448_s21  ;;  %s3922_s17 = int_to_ptr.vmem [resolvable:$true] %s2155_s17 }
  0x92   : > { %2532 = vmatpush3.bf16.msra.mxu0 %v2849_v13  ;;  %2568 = vmatpush3.bf16.msra.mxu1 %v2850_v14  ;;  %479 = vst.msk [vmem:[#allocation2 + $0x3f] sm:$0xff] %vm417_vm1, %v2309_v26  ;;  %v2858_v30 = vld [vmem:[#allocation9 + $0x48] sm:$0xff]   ;;  %v2859_v31 = vld [vmem:[#allocation9] sm:$0xff]   ;;  %v2861_v44 = vld [vmem:[#allocation9 + $0xb8] sm:$0xff]   ;;  %s2141_s20 = scalar_lea.sflag [#allocation6], %s3454_s0  ;;  %s3131_s19 = scalar_lea.vmem %s3922_s17, 4096 }
  0x93   : > { %2533 = vmatprep.subr.bf16.mxu0 %v3218_v0  ;;  %2569 = vmatprep.subr.bf16.mxu1 %v3218_v0  ;;  %v2860_v32 = vld [vmem:[#allocation9 + $0x40] sm:$0xff]   ;;  %v2862_v45 = vld [vmem:[#allocation9 + $0xb0] sm:$0xff]   ;;  %v2863_v49 = vld [vmem:[#allocation9 + $0xa8] sm:$0xff]   ;;  %p3132_p0 = scmp.ne.s32.totalorder %s3922_s17, %s3131_s19  ;;  %p4011_p5 = scmp.ne.s32.totalorder %s4001_s16, 0 }
  0x94   : > { %v2864_v50 = vld [vmem:[#allocation9 + $0xa0] sm:$0xff]   ;;  %v2865_v54 = vld [vmem:[#allocation9 + $0x98] sm:$0xff]   ;;  %v2866_v55 = vld [vmem:[#allocation9 + $0x90] sm:$0xff]   ;;  %s3222_s9 = smov [#allocation13]  }
  0x95   : > { %487 = vrot.lane.b32.xlu1 %v2311_v11, %s3220_s11  ;;  %485 = vrot.lane.b32.xlu0 %v2310_v12, %s3220_s11  ;;  %v2867_v59 = vld [vmem:[#allocation9 + $0x88] sm:$0xff]   ;;  %v2868_v60 = vld [vmem:[#allocation9 + $0x80] sm:$0xff]   ;;  %v2869_v63 = vld [vmem:[#allocation10 + $0x38] sm:$0xff]   ;;  %p3133_p3 = pnand %p3132_p0, %p4011_p5  ;;  %s3135_s23 = sshll.u32 %s3222_s9, 4  ;;  %s3136_s23 = int_to_ptr.vmem [resolvable:$false] %s3135_s23 }
  0x96   : > { %2534 = vmatpush3.bf16.msra.mxu0 %v2851_v15  ;;  %2570 = vmatpush3.bf16.msra.mxu1 %v2852_v18  ;;  %v2870_v1 = vld [vmem:[#allocation10 + $0x78] sm:$0xff]   ;;  %v2871_v2 = vld [vmem:[#allocation10 + $0x30] sm:$0xff]   ;;  %v2873_v4 = vld [vmem:[#allocation10 + $0x28] sm:$0xff]   ;;  %s3137_s15 = scalar_lea.vmem %s3136_s23, 8192  ;;  %p3138_p9 = scmp.lt.s32.totalorder %s3922_s17, %s3136_s23 }
  0x97   : > { %2535 = vmatprep.subr.bf16.mxu0 %v3218_v0  ;;  %2571 = vmatprep.subr.bf16.mxu1 %v3218_v0  ;;  %v2872_v3 = vld [vmem:[#allocation10 + $0x70] sm:$0xff]   ;;  %v2874_v5 = vld [vmem:[#allocation10 + $0x68] sm:$0xff]   ;;  %v2875_v6 = vld [vmem:[#allocation10 + $0x20] sm:$0xff]   ;;  %p3134_p7 = pneg %p3133_p3  ;;  %p3139_p2 = scmp.lt.s32.totalorder %s3137_s15, %s3131_s19 }
  0x98   : > { %v2876_v7 = vld [vmem:[#allocation10 + $0x60] sm:$0xff]   ;;  %v2877_v8 = vld [vmem:[#allocation10 + $0x18] sm:$0xff]   ;;  %v2879_v10 = vld [vmem:[#allocation10 + $0x10] sm:$0xff]  }
  0x99   : > { %v2878_v9 = vld [vmem:[#allocation10 + $0x58] sm:$0xff]   ;;  %v2880_v11 = vld [vmem:[#allocation10 + $0x50] sm:$0xff]   ;;  %v2881_v12 = vld [vmem:[#allocation10 + $0x8] sm:$0xff]   ;;  %p3140_p10 = por %p3139_p2, %p3138_p9 }
  0x9a   : > { %2536 = vmatpush3.bf16.msra.mxu0 %v2853_v21  ;;  %2572 = vmatpush3.bf16.msra.mxu1 %v2854_v22  ;;  %v2882_v13 = vld [vmem:[#allocation10 + $0x48] sm:$0xff]   ;;  %v2883_v14 = vld [vmem:[#allocation10] sm:$0xff]  }
  0x9b   : > { %2537 = vmatprep.subr.bf16.mxu0 %v3218_v0  ;;  %2573 = vmatprep.subr.bf16.mxu1 %v3218_v0  ;;  %v2884_v15 = vld [vmem:[#allocation10 + $0x40] sm:$0xff]   ;;  %p3141_p13 = pnand %p3140_p10, %p3134_p7 }
  0x9e   : > { %2538 = vmatpush3.bf16.msra.mxu0 %v2855_v23  ;;  %2574 = vmatpush3.bf16.msra.mxu1 %v2856_v28 }
  0x9f   : > { %2539 = vmatprep.subr.bf16.mxu0 %v3218_v0  ;;  %2575 = vmatprep.subr.bf16.mxu1 %v3218_v0 }
  0xa2   : > { %2540 = vmatpush3.bf16.msra.mxu0 %v2857_v29  ;;  %2576 = vmatpush3.bf16.msra.mxu1 %v2858_v30 }
  0xa3   : > { %2541 = vmatprep.subr.bf16.mxu0 %v3218_v0  ;;  %2577 = vmatprep.subr.bf16.mxu1 %v3218_v0 }
  0xa6   : > { %2542 = vmatpush3.bf16.msra.mxu0 %v2859_v31  ;;  %2578 = vmatpush3.bf16.msra.mxu1 %v2860_v32 }
  0xa7   : > { %2599 = vmatprep.subr.bf16.mxu0 %v3218_v0  ;;  %2635 = vmatprep.subr.bf16.mxu1 %v3218_v0 }
  0xfb   : > { %v446_v33 = vpop.permute.xlu1 %445  ;;  %v425_v34 = vpop.permute.xlu0 %424 }
  0xfc   : > { %451 = vst.msk [vmem:[#allocation2 + $0x13] sm:$0xff] %vm430_vm2, %v446_v33  ;;  %431 = vst.msk [vmem:[#allocation2 + $0x1] sm:$0xff] %vm430_vm2, %v425_v34 }
  0xff   : > { %v448_v35 = vpop.permute.xlu1 %447  ;;  %v427_v36 = vpop.permute.xlu0 %426 }
 0x100   : > { %452 = vst.msk [vmem:[#allocation2 + $0x1b] sm:$0xff] %vm430_vm2, %v448_v35  ;;  %432 = vst.msk [vmem:[#allocation2 + $0x9] sm:$0xff] %vm430_vm2, %v427_v36 }
 0x103   : > { %v468_v37 = vpop.permute.xlu1 %467  ;;  %v466_v38 = vpop.permute.xlu0 %465  ;;  %v493_v39 = vld [vmem:[#allocation2] sm:$0xff] }
 0x104   : > { %472 = vst.msk [vmem:[#allocation2 + $0x2d] sm:$0xff] %vm430_vm2, %v468_v37  ;;  %471 = vst.msk [vmem:[#allocation2 + $0x25] sm:$0xff] %vm430_vm2, %v466_v38 }
 0x107   : > { %v494_v40 = vld [vmem:[#allocation2 + $0x8] sm:$0xff]  ;;  %v488_v41 = vpop.permute.xlu1 %487  ;;  %v486_v42 = vpop.permute.xlu0 %485  ;;  %v495_v46 = vld [vmem:[#allocation2 + $0x10] sm:$0xff]  ;;  %v496_v47 = vld [vmem:[#allocation2 + $0x18] sm:$0xff] }
 0x108   : > { %v502_v43 = vpack.c.bf16 %v494_v40, %v493_v39  ;;  %492 = vst.msk [vmem:[#allocation2 + $0x3f] sm:$0xff] %vm430_vm2, %v488_v41  ;;  %491 = vst.msk [vmem:[#allocation2 + $0x37] sm:$0xff] %vm430_vm2, %v486_v42  ;;  %v503_v48 = vpack.c.bf16 %v496_v47, %v495_v46 }
 0x10a   : > { %2544 = vmatmul.mubr.bf16.vlgmr.msra.gmra.mxu0 %v502_v43  ;;  %2580 = vmatmul.mubr.bf16.vlgmr.msra.gmra.mxu1 %v502_v43 }
 0x10b   : > { %2547 = vmatprep.mubr.msk.bf16.mxu0 %vm3219_vm0, %v3218_v0  ;;  %2583 = vmatprep.mubr.msk.bf16.mxu1 %vm3219_vm0, %v3218_v0  ;;  %v497_v51 = vld [vmem:[#allocation2 + $0x20] sm:$0xff]  ;;  %v498_v52 = vld [vmem:[#allocation2 + $0x28] sm:$0xff] }
 0x10c   : > { %2600 = vmatpush3.bf16.msra.mxu0 %v2861_v44  ;;  %v504_v53 = vpack.c.bf16 %v498_v52, %v497_v51  ;;  %2636 = vmatpush3.bf16.msra.mxu1 %v2869_v63 }
 0x10d   : > { %2601 = vmatprep.subr.bf16.mxu0 %v3218_v0  ;;  %2637 = vmatprep.subr.bf16.mxu1 %v3218_v0 }
 0x10f   : > { %v499_v56 = vld [vmem:[#allocation2 + $0x30] sm:$0xff]  ;;  %v500_v57 = vld [vmem:[#allocation2 + $0x38] sm:$0xff]  ;;  %v501_v61 = vld [vmem:[#allocation2 + $0x40] sm:$0xff] }
 0x110   : > { %2602 = vmatpush3.bf16.msra.mxu0 %v2862_v45  ;;  %v505_v58 = vpack.c.bf16 %v500_v57, %v499_v56  ;;  %v506_v62 = vpack.c.bf16 %v501_v61, %v501_v61  ;;  %2638 = vmatpush3.bf16.msra.mxu1 %v2871_v2 }
 0x111   : > { %2603 = vmatprep.subr.bf16.mxu0 %v3218_v0  ;;  %2639 = vmatprep.subr.bf16.mxu1 %v3218_v0 }
 0x112   : > { %2548 = vmatmul.mubr.bf16.gmra.mxu0 %v503_v48  ;;  %2584 = vmatmul.mubr.bf16.gmra.mxu1 %v503_v48 }
 0x113   : > { %2551 = vmatprep.mubr.msk.bf16.mxu0 %vm3219_vm0, %v3218_v0  ;;  %2587 = vmatprep.mubr.msk.bf16.mxu1 %vm3219_vm0, %v3218_v0 }
 0x114   : > { %2604 = vmatpush3.bf16.msra.mxu0 %v2863_v49  ;;  %2640 = vmatpush3.bf16.msra.mxu1 %v2873_v4 }
 0x115   : > { %2605 = vmatprep.subr.bf16.mxu0 %v3218_v0  ;;  %2641 = vmatprep.subr.bf16.mxu1 %v3218_v0 }
 0x118   : > { %2606 = vmatpush3.bf16.msra.mxu0 %v2864_v50  ;;  %2642 = vmatpush3.bf16.msra.mxu1 %v2875_v6 }
 0x119   : > { %2607 = vmatprep.subr.bf16.mxu0 %v3218_v0  ;;  %2643 = vmatprep.subr.bf16.mxu1 %v3218_v0 }
 0x11a   : > { %2552 = vmatmul.mubr.bf16.gmra.mxu0 %v504_v53  ;;  %2588 = vmatmul.mubr.bf16.gmra.mxu1 %v504_v53 }
 0x11b   : > { %2555 = vmatprep.mubr.msk.bf16.mxu0 %vm3219_vm0, %v3218_v0  ;;  %2591 = vmatprep.mubr.msk.bf16.mxu1 %vm3219_vm0, %v3218_v0 }
 0x11c   : > { %2608 = vmatpush3.bf16.msra.mxu0 %v2865_v54  ;;  %2644 = vmatpush3.bf16.msra.mxu1 %v2877_v8 }
 0x11d   : > { %2609 = vmatprep.subr.bf16.mxu0 %v3218_v0  ;;  %2645 = vmatprep.subr.bf16.mxu1 %v3218_v0 }
 0x120   : > { %2610 = vmatpush3.bf16.msra.mxu0 %v2866_v55  ;;  %2646 = vmatpush3.bf16.msra.mxu1 %v2879_v10 }
 0x121   : > { %2611 = vmatprep.subr.bf16.mxu0 %v3218_v0  ;;  %2647 = vmatprep.subr.bf16.mxu1 %v3218_v0 }
 0x122   : > { %2556 = vmatmul.mubr.bf16.gmra.mxu0 %v505_v58  ;;  %2592 = vmatmul.mubr.bf16.gmra.mxu1 %v505_v58 }
 0x123   : > { %2559 = vmatprep.mubr.msk.bf16.mxu0 %vm3219_vm0, %v3218_v0  ;;  %2595 = vmatprep.mubr.msk.bf16.mxu1 %vm3219_vm0, %v3218_v0 }
 0x124   : > { %2612 = vmatpush3.bf16.msra.mxu0 %v2867_v59  ;;  %2648 = vmatpush3.bf16.msra.mxu1 %v2881_v12 }
 0x125   : > { %2613 = vmatprep.subr.bf16.mxu0 %v3218_v0  ;;  %2649 = vmatprep.subr.bf16.mxu1 %v3218_v0 }
 0x128   : > { %2614 = vmatpush3.bf16.msra.mxu0 %v2868_v60  ;;  %2650 = vmatpush3.bf16.msra.mxu1 %v2883_v14 }
 0x129   : > { %2671 = vmatprep.subr.bf16.mxu0 %v3218_v0  ;;  %2707 = vmatprep.subr.bf16.mxu1 %v3218_v0 }
 0x12a   : > { %2560 = vmatmul.mubr.bf16.gmra.mxu0 %v506_v62  ;;  %2596 = vmatmul.mubr.bf16.gmra.mxu1 %v506_v62 }
 0x12b   : > { %2615 = vmatprep.mubr.msk.bf16.mxu0 %vm3219_vm0, %v3218_v0  ;;  %2651 = vmatprep.mubr.msk.bf16.mxu1 %vm3219_vm0, %v3218_v0 }
 0x132   : > { %2616 = vmatmul.mubr.bf16.vlgmr.msra.gmra.mxu0 %v502_v43 }
 0x133   : > { %2619 = vmatprep.mubr.msk.bf16.mxu0 %vm3219_vm0, %v3218_v0  ;;  %2672 = vmatpush3.bf16.msra.mxu0 %v2870_v1 }
 0x134   : > { %2673 = vmatprep.subr.bf16.mxu0 %v3218_v0 }
 0x137   : > { %2674 = vmatpush3.bf16.msra.mxu0 %v2872_v3 }
 0x138   : > { %2675 = vmatprep.subr.bf16.mxu0 %v3218_v0 }
 0x13a   : > { %2620 = vmatmul.mubr.bf16.gmra.mxu0 %v503_v48 }
 0x13b   : > { %2623 = vmatprep.mubr.msk.bf16.mxu0 %vm3219_vm0, %v3218_v0  ;;  %2676 = vmatpush3.bf16.msra.mxu0 %v2874_v5 }
 0x13c   : > { %2677 = vmatprep.subr.bf16.mxu0 %v3218_v0 }
 0x13f   : > { %2678 = vmatpush3.bf16.msra.mxu0 %v2876_v7  ;;  %v3635_v7 = vld [vmem:[%s3971_s4] ss:$0 sm:$0xff] }
 0x140   : > { %2679 = vmatprep.subr.bf16.mxu0 %v3218_v0 }
 0x142   : > { %2624 = vmatmul.mubr.bf16.gmra.mxu0 %v504_v53 }
 0x143   : > { %2627 = vmatprep.mubr.msk.bf16.mxu0 %vm3219_vm0, %v3218_v0  ;;  %2680 = vmatpush3.bf16.msra.mxu0 %v2878_v9 }
 0x144   : > { %2681 = vmatprep.subr.bf16.mxu0 %v3218_v0 }
 0x147   : > { %2682 = vmatpush3.bf16.msra.mxu0 %v2880_v11 }
 0x148   : > { %2683 = vmatprep.subr.bf16.mxu0 %v3218_v0 }
 0x14a   : > { %2628 = vmatmul.mubr.bf16.gmra.mxu0 %v505_v58 }
 0x14b   : > { %2631 = vmatprep.mubr.msk.bf16.mxu0 %vm3219_vm0, %v3218_v0  ;;  %2684 = vmatpush3.bf16.msra.mxu0 %v2882_v13 }
 0x14c   : > { %2685 = vmatprep.subr.bf16.mxu0 %v3218_v0 }
 0x14f   : > { %2686 = vmatpush3.bf16.msra.mxu0 %v2884_v15 }
 0x152   : > { %2632 = vmatmul.mubr.bf16.gmra.mxu0 %v506_v62 }
 0x153   : > { %2687 = vmatprep.mubr.msk.bf16.mxu0 %vm3219_vm0, %v3218_v0 }
 0x1ca   : > { %v605_v16 = vpop.f32.mrf.mxu0  ;;  %v751_v17 = vpop.f32.mrf.mxu1 }
 0x1cb   : > { %v799_v58 = vrot.slane %v751_v17, 1 }
 0x1cc   : > { %v2545_v18 = vpop.f32.mrf.mxu0  ;;  %v2581_v19 = vpop.f32.mrf.mxu1 }
 0x1ce   : > { %v608_v20 = vpop.f32.mrf.mxu0  ;;  %v754_v21 = vpop.f32.mrf.mxu1 }
 0x1cf   : > { %v800_v56 = vrot.slane %v754_v21, 1 }
 0x1d0   : > { %v2546_v22 = vpop.f32.mrf.mxu0  ;;  %v2582_v23 = vpop.f32.mrf.mxu1 }
 0x1d1   : > { %v801_v60 = vsel %vm798_vm3, %v799_v58, %v800_v56 }
 0x1d2   : > { %v613_v24 = vpop.f32.mrf.mxu0  ;;  %v759_v25 = vpop.f32.mrf.mxu1  ;;  %v825_v2 = vadd.f32 %v801_v60, %v605_v16 }
 0x1d3   : > { %v802_v61 = vrot.slane %v759_v25, 1 }
 0x1d4   : > { %v2549_v26 = vpop.f32.mrf.mxu0  ;;  %v2585_v27 = vpop.f32.mrf.mxu1 }
 0x1d5   : > { %v803_v4 = vsel %vm798_vm3, %v800_v56, %v802_v61 }
 0x1d6   : > { %v3604_v28 = vpop.f32.mrf.mxu0  ;;  %v3606_v29 = vpop.f32.mrf.mxu1  ;;  %v826_v11 = vadd.f32 %v803_v4, %v608_v20 }
 0x1d7   : > { %v804_v5 = vrot.slane %v3606_v29, 1 }
 0x1d8   : > { %v2550_v30 = vpop.f32.mrf.mxu0  ;;  %v2586_v31 = vpop.f32.mrf.mxu1 }
 0x1d9   : > { %v805_v14 = vsel %vm798_vm3, %v802_v61, %v804_v5 }
 0x1da   : > { %v3608_v32 = vpop.f32.mrf.mxu0  ;;  %v3610_v33 = vpop.f32.mrf.mxu1  ;;  %v827_v22 = vadd.f32 %v805_v14, %v613_v24 }
 0x1db   : > { %v806_v15 = vrot.slane %v3610_v33, 1 }
 0x1dc   : > { %v2553_v34 = vpop.f32.mrf.mxu0  ;;  %v2589_v35 = vpop.f32.mrf.mxu1 }
 0x1dd   : > { %v807_v25 = vsel %vm798_vm3, %v804_v5, %v806_v15 }
 0x1de   : > { %v3612_v36 = vpop.f32.mrf.mxu0  ;;  %v3614_v37 = vpop.f32.mrf.mxu1  ;;  %v828_v34 = vadd.f32 %v807_v25, %v3604_v28 }
 0x1df   : > { %v808_v26 = vrot.slane %v3614_v37, 1 }
 0x1e0   : > { %v2554_v38 = vpop.f32.mrf.mxu0  ;;  %v2590_v39 = vpop.f32.mrf.mxu1 }
 0x1e1   : > { %v809_v38 = vsel %vm798_vm3, %v806_v15, %v808_v26 }
 0x1e2   : > { %v3616_v40 = vpop.f32.mrf.mxu0  ;;  %v3618_v41 = vpop.f32.mrf.mxu1 }
 0x1e3   : > { %v810_v39 = vrot.slane %v3618_v41, 1 }
 0x1e4   : > { %v2557_v42 = vpop.f32.mrf.mxu0  ;;  %v2593_v43 = vpop.f32.mrf.mxu1 }
 0x1e6   : > { %v3620_v44 = vpop.f32.mrf.mxu0  ;;  %v3622_v45 = vpop.f32.mrf.mxu1 }
 0x1e8   : > { %v2558_v46 = vpop.f32.mrf.mxu0  ;;  %v2594_v47 = vpop.f32.mrf.mxu1 }
 0x1ea   : > { %v3624_v48 = vpop.f32.mrf.mxu0  ;;  %v3626_v49 = vpop.f32.mrf.mxu1 }
 0x1ec   : > { %v2561_v50 = vpop.f32.mrf.mxu0  ;;  %v2597_v51 = vpop.f32.mrf.mxu1 }
 0x1ed   : > { %v829_v50 = vadd.f32 %v809_v38, %v3608_v32 }
 0x1ee   : > { %v640_v52 = vpop.f32.mrf.mxu0  ;;  %v786_v53 = vpop.f32.mrf.mxu1 }
 0x1ef   : > { %v811_v52 = vsel %vm798_vm3, %v808_v26, %v810_v39  ;;  %v812_v53 = vrot.slane %v3622_v45, 1 }
 0x1f0   : > { %v2562_v54 = vpop.f32.mrf.mxu0  ;;  %v2598_v55 = vpop.f32.mrf.mxu1  ;;  %v830_v58 = vadd.f32 %v811_v52, %v3612_v36 }
 0x1f1   : > { %v813_v61 = vsel %vm798_vm3, %v810_v39, %v812_v53 }
 0x1f2   : > { %v933_v57 = vpop.f32.mrf.mxu0  ;;  %v831_v36 = vadd.f32 %v813_v61, %v3616_v40 }
 0x1f3   : > { %v981_v63 = vrot.slane %v933_v57, 2 }
 0x1f4   : > { %v2617_v59 = vpop.f32.mrf.mxu0 }
 0x1f6   : > { %v936_v62 = vpop.f32.mrf.mxu0 }
 0x1f7   : > { %v982_v1 = vrot.slane %v936_v62, 2  ;;  %v814_v62 = vrot.slane %v3626_v49, 1 }
 0x1f8   : > { %v2618_v3 = vpop.f32.mrf.mxu0 }
 0x1f9   : > { %v983_v6 = vsel %vm980_vm4, %v981_v63, %v982_v1  ;;  %v833_v15 = vadd.f32 %v814_v62, %v3624_v48 }
 0x1fa   : > { %v1007_v8 = vadd.f32 %v983_v6, %v825_v2  ;;  %v941_v9 = vpop.f32.mrf.mxu0 }
 0x1fb   : > { %v984_v10 = vrot.slane %v941_v9, 2  ;;  %v815_v9 = vsel %vm798_vm3, %v812_v53, %v814_v62 }
 0x1fc   : > { %v3638_v12 = vadd.f32 %v3635_v7, %v1007_v8  ;;  %v2621_v13 = vpop.f32.mrf.mxu0  ;;  %v832_v40 = vadd.f32 %v815_v9, %v3620_v44 }
 0x1fd   : > { %v985_v16 = vsel %vm980_vm4, %v982_v1, %v984_v10 }
 0x1fe   : > { %v2337_v17 = vmul.f32 -1.442695, %v3638_v12  ;;  %v1008_v18 = vadd.f32 %v985_v16, %v826_v11  ;;  %v944_v19 = vpop.f32.mrf.mxu0 }
 0x1ff   : > { %v986_v21 = vrot.slane %v944_v19, 2 }
 0x200   : > { %2925 = vpow2.f32 %v2337_v17  ;;  %v3645_v23 = vadd.f32 %v3635_v7, %v1008_v18  ;;  %v2622_v20 = vpop.f32.mrf.mxu0 }
 0x201   : > { %v987_v27 = vsel %vm980_vm4, %v984_v10, %v986_v21 }
 0x202   : > { %v2338_v29 = vmul.f32 -1.442695, %v3645_v23  ;;  %v1009_v30 = vadd.f32 %v987_v27, %v827_v22  ;;  %v949_v31 = vpop.f32.mrf.mxu0 }
 0x203   : > { %v988_v33 = vrot.slane %v949_v31, 2 }
 0x204   : > { %2927 = vpow2.f32 %v2338_v29  ;;  %v3653_v24 = vadd.f32 %v3635_v7, %v1009_v30  ;;  %v2625_v35 = vpop.f32.mrf.mxu0 }
 0x205   : > { %v989_v37 = vsel %vm980_vm4, %v986_v21, %v988_v33 }
 0x206   : > { %v2339_v42 = vmul.f32 -1.442695, %v3653_v24  ;;  %v1010_v43 = vadd.f32 %v989_v37, %v828_v34  ;;  %v952_v46 = vpop.f32.mrf.mxu0 }
 0x207   : > { %v990_v47 = vrot.slane %v952_v46, 2 }
 0x208   : > { %2929 = vpow2.f32 %v2339_v42  ;;  %v3661_v28 = vadd.f32 %v3635_v7, %v1010_v43  ;;  %v2626_v51 = vpop.f32.mrf.mxu0 }
 0x209   : > { %v991_v41 = vsel %vm980_vm4, %v988_v33, %v990_v47 }
 0x20a   : > { %v2340_v54 = vmul.f32 -1.442695, %v3661_v28  ;;  %v1011_v55 = vadd.f32 %v991_v41, %v829_v50  ;;  %v957_v56 = vpop.f32.mrf.mxu0 }
 0x20b   : > { %v992_v57 = vrot.slane %v957_v56, 2 }
 0x20c   : > { %2931 = vpow2.f32 %v2340_v54  ;;  %v3669_v32 = vadd.f32 %v3635_v7, %v1011_v55  ;;  %v2629_v59 = vpop.f32.mrf.mxu0 }
 0x20d   : > { %v2926_v60 = vpop.eup %2925  ;;  %v993_v45 = vsel %vm980_vm4, %v990_v47, %v992_v57 }
 0x20e   : > { %v1059_v63 = vadd.f32 1.0, %v2926_v60  ;;  %v2341_v1 = vmul.f32 -1.442695, %v3669_v32  ;;  %v1012_v2 = vadd.f32 %v993_v45, %v830_v58  ;;  %v960_v3 = vpop.f32.mrf.mxu0 }
 0x20f   : > { %v994_v4 = vrot.slane %v960_v3, 2 }
 0x210   : > { %2933 = vrcp.f32 %v1059_v63  ;;  %v3677_v5 = vadd.f32 %v3635_v7, %v1012_v2  ;;  %v2630_v6 = vpop.f32.mrf.mxu0 }
 0x211   : > { %v2928_v8 = vpop.eup %2927  ;;  %2935 = vpow2.f32 %v2341_v1  ;;  %v995_v49 = vsel %vm980_vm4, %v992_v57, %v994_v4  ;;  %v2887_v1 = vld [vmem:[#allocation10 + $0xa8] sm:$0xff]  }
 0x212   : > { %v1060_v10 = vadd.f32 1.0, %v2928_v8  ;;  %v2342_v11 = vmul.f32 -1.442695, %v3677_v5  ;;  %v1013_v13 = vadd.f32 %v995_v49, %v831_v36  ;;  %v965_v14 = vpop.f32.mrf.mxu0  ;;  %v2888_v36 = vld [vmem:[#allocation10 + $0xa0] sm:$0xff]  }
 0x213   : > { %v996_v16 = vrot.slane %v965_v14, 2 }
 0x214   : > { %2937 = vrcp.f32 %v1060_v10  ;;  %v3685_v17 = vadd.f32 %v3635_v7, %v1013_v13  ;;  %v2633_v18 = vpop.f32.mrf.mxu0  ;;  %v2890_v13 = vld [vmem:[#allocation10 + $0x90] sm:$0xff]  }
 0x215   : > { %v2930_v19 = vpop.eup %2929  ;;  %2939 = vpow2.f32 %v2342_v11  ;;  %v997_v21 = vsel %vm980_vm4, %v994_v4, %v996_v16  ;;  %v1015_v22 = vadd.f32 %v996_v16, %v833_v15  ;;  %v2889_v11 = vld [vmem:[#allocation10 + $0x98] sm:$0xff]  }
 0x216   : > { %v1061_v20 = vadd.f32 1.0, %v2930_v19  ;;  %v2343_v25 = vmul.f32 -1.442695, %v3685_v17  ;;  %v1014_v26 = vadd.f32 %v997_v21, %v832_v40  ;;  %v968_v27 = vpop.f32.mrf.mxu0  ;;  %v2891_v40 = vld [vmem:[#allocation10 + $0x88] sm:$0xff]   ;;  %v2895_v21 = vld [vmem:[#allocation12 + $0x74] ss:$8 sps:$4 sm:$0xff]  }
 0x217   : > { %v3690_v48 = vadd.f32 %v3635_v7, %v1015_v22  ;;  %v2893_v22 = vld [vmem:[#allocation12 + $0x70] ss:$8 sps:$4 sm:$0xff]   ;;  %1813 = vmatprep.subr.bf16.mxu0 %v2895_v21 }
 0x218   : > { %2941 = vrcp.f32 %v1061_v20  ;;  %v3693_v44 = vadd.f32 %v3635_v7, %v1014_v26  ;;  %v2634_v29 = vpop.f32.mrf.mxu0  ;;  %v2898_v20 = vld [vmem:[#allocation12 + $0x64] ss:$8 sps:$4 sm:$0xff]   ;;  %v2901_v26 = vld [vmem:[#allocation12 + $0x54] ss:$8 sps:$4 sm:$0xff]   ;;  %v2899_v27 = vld [vmem:[#allocation12 + $0x50] ss:$8 sps:$4 sm:$0xff]  }
 0x219   : > { %v2932_v30 = vpop.eup %2931  ;;  %2943 = vpow2.f32 %v2343_v25  ;;  %v2345_v31 = vmul.f32 -1.442695, %v3690_v48  ;;  %v2896_v25 = vld [vmem:[#allocation12 + $0x60] ss:$8 sps:$4 sm:$0xff]   ;;  %v2907_v29 = vld [vmem:[#allocation12 + $0x34] ss:$8 sps:$4 sm:$0xff]  }
 0x21a   : > { %v1062_v33 = vadd.f32 1.0, %v2932_v30  ;;  %v2344_v34 = vmul.f32 -1.442695, %v3693_v44  ;;  %v2905_v30 = vld [vmem:[#allocation12 + $0x30] ss:$8 sps:$4 sm:$0xff]  }
 0x21b   : > { %2945 = vpow2.f32 %v2345_v31  ;;  %v2908_v31 = vld [vmem:[#allocation12 + $0x20] ss:$8 sps:$4 sm:$0xff]  }
 0x21c   : > { %2947 = vrcp.f32 %v1062_v33  ;;  %v2913_v33 = vld [vmem:[#allocation12 + $0x14] ss:$8 sps:$4 sm:$0xff]  }
 0x21d   : > { %v2934_v35 = vpop.eup %2933  ;;  %2949 = vpow2.f32 %v2344_v34  ;;  %v2911_v34 = vld [vmem:[#allocation12 + $0x10] ss:$8 sps:$4 sm:$0xff]  }
 0x21e   : > { %v2936_v38 = vpop.eup %2935  ;;  %v1086_v39 = vmul.f32 %v2934_v35, %v3638_v12  ;;  %v2916_v35 = vld [vmem:[#allocation12 + $0x4] ss:$8 sps:$4 sm:$0xff]  }
 0x21f   : > { %v1063_v37 = vadd.f32 1.0, %v2936_v38  ;;  %v2914_v38 = vld [vmem:[#allocation12] ss:$8 sps:$4 sm:$0xff]  }
 0x220   : > { %1095 = vst [vmem:[#allocation3 + $0x1] sm:$0xff] %v1086_v39  ;;  %v3221_v39 = vmov 0  }
 0x221   : > { %v2938_v42 = vpop.eup %2937  ;;  %2951 = vrcp.f32 %v1063_v37 }
 0x222   : > { %v2940_v7 = vpop.eup %2939  ;;  %v1087_v43 = vmul.f32 %v2938_v42, %v3645_v23 }
 0x223   : > { %v1064_v46 = vadd.f32 1.0, %v2940_v7 }
 0x224   : > { %1096 = vst [vmem:[#allocation3 + $0x9] sm:$0xff] %v1087_v43 }
 0x225   : > { %v2942_v47 = vpop.eup %2941  ;;  %2953 = vrcp.f32 %v1064_v46 }
 0x226   : > { %v2944_v50 = vpop.eup %2943  ;;  %v1088_v51 = vmul.f32 %v2942_v47, %v3653_v24  ;;  %v2885_v24 = vld [vmem:[#allocation10 + $0xb8] sm:$0xff]  }
 0x227   : > { %v1065_v52 = vadd.f32 1.0, %v2944_v50  ;;  %v1112_v56 = vld [vmem:[#allocation3] sm:$0xff] }
 0x228   : > { %v2946_v53 = vpop.eup %2945  ;;  %1097 = vst [vmem:[#allocation3 + $0x11] sm:$0xff] %v1088_v51 }
 0x229   : > { %v2948_v41 = vpop.eup %2947  ;;  %1105 = vst [vmem:[#allocation3 + $0x11] sm:$0x1] %v3218_v0  ;;  %1106 = vst [vmem:[#allocation3 + $0x12] sm:$0x1] %v3218_v0  ;;  %2955 = vrcp.f32 %v1065_v52  ;;  %v1067_v12 = vadd.f32 1.0, %v2946_v53 }
 0x22a   : > { %v2950_v54 = vpop.eup %2949  ;;  %v1089_v23 = vmul.f32 %v2948_v41, %v3661_v28  ;;  %v2886_v28 = vld [vmem:[#allocation10 + $0xb0] sm:$0xff]  }
 0x22b   : > { %v1066_v55 = vadd.f32 1.0, %v2950_v54  ;;  %2957 = vrcp.f32 %v1067_v12  ;;  %v1113_v57 = vld [vmem:[#allocation3 + $0x8] sm:$0xff] }
 0x22c   : > { %1098 = vst [vmem:[#allocation3 + $0x19] sm:$0xff] %v1089_v23  ;;  %v3703_v58 = vpack.c.bf16 %v1113_v57, %v1112_v56 }
 0x22d   : > { %2959 = vrcp.f32 %v1066_v55 }
 0x22e   : > { %v2952_v59 = vpop.eup %2951  ;;  %2652 = vmatmul.mubr.bf16.vlgmr.msra.gmra.mxu1 %v3703_v58  ;;  %2688 = vmatmul.mubr.bf16.vlgmr.msra.gmra.mxu0 %v3703_v58 }
 0x22f   : > { %v1090_v60 = vmul.f32 %v2952_v59, %v3669_v32  ;;  %2655 = vmatprep.mubr.msk.bf16.mxu1 %vm3219_vm0, %v3218_v0  ;;  %2691 = vmatprep.mubr.msk.bf16.mxu0 %vm3219_vm0, %v3218_v0 }
 0x230   : > { %2708 = vmatpush3.bf16.msra.mxu1 %v2885_v24  ;;  %v1114_v45 = vld [vmem:[#allocation3 + $0x10] sm:$0xff]  ;;  %1814 = vmatpush1.bf16.msra.mxu0 %v2893_v22 }
 0x231   : > { %1099 = vst [vmem:[#allocation3 + $0x21] sm:$0xff] %v1090_v60  ;;  %2709 = vmatprep.subr.bf16.mxu1 %v3218_v0  ;;  %1815 = vmatprep.subr.bf16.mxu0 %v2898_v20 }
 0x232   : > { %v2954_v61 = vpop.eup %2953  ;;  %1107 = vst [vmem:[#allocation3 + $0x23] sm:$0x1] %v3218_v0  ;;  %1108 = vst [vmem:[#allocation3 + $0x24] sm:$0x1] %v3218_v0 }
 0x233   : > { %v1091_v62 = vmul.f32 %v2954_v61, %v3677_v5  ;;  %v1115_v32 = vld [vmem:[#allocation3 + $0x18] sm:$0xff] }
 0x234   : > { %v1122_v63 = vpack.c.bf16 %v1115_v32, %v1114_v45  ;;  %2710 = vmatpush3.bf16.msra.mxu1 %v2886_v28  ;;  %1816 = vmatpush1.bf16.msra.mxu0 %v2896_v25 }
 0x235   : > { %1100 = vst [vmem:[#allocation3 + $0x29] sm:$0xff] %v1091_v62  ;;  %2711 = vmatprep.subr.bf16.mxu1 %v3218_v0  ;;  %1817 = vmatprep.subr.bf16.mxu0 %v2901_v26 }
 0x236   : > { %v2956_v2 = vpop.eup %2955  ;;  %2656 = vmatmul.mubr.bf16.gmra.mxu1 %v1122_v63  ;;  %2692 = vmatmul.mubr.bf16.gmra.mxu0 %v1122_v63 }
 0x237   : > { %v1092_v3 = vmul.f32 %v2956_v2, %v3685_v17  ;;  %2659 = vmatprep.mubr.msk.bf16.mxu1 %vm3219_vm0, %v3218_v0  ;;  %2695 = vmatprep.mubr.msk.bf16.mxu0 %vm3219_vm0, %v3218_v0  ;;  %v2892_v17 = vld [vmem:[#allocation10 + $0x80] sm:$0xff]  }
 0x238   : > { %v2958_v4 = vpop.eup %2957  ;;  %2712 = vmatpush3.bf16.msra.mxu1 %v2887_v1  ;;  %1818 = vmatpush1.bf16.msra.mxu0 %v2899_v27 }
 0x239   : > { %1101 = vst [vmem:[#allocation3 + $0x31] sm:$0xff] %v1092_v3  ;;  %v1094_v5 = vmul.f32 %v2958_v4, %v3690_v48  ;;  %2713 = vmatprep.subr.bf16.mxu1 %v3218_v0  ;;  %v1116_v9 = vld [vmem:[#allocation3 + $0x20] sm:$0xff]  ;;  %v2904_v48 = vld [vmem:[#allocation12 + $0x44] ss:$8 sps:$4 sm:$0xff]  }
 0x23a   : > { %v2960_v6 = vpop.eup %2959  ;;  %1109 = vst [vmem:[#allocation3 + $0x35] sm:$0x1] %v3218_v0  ;;  %1110 = vst [vmem:[#allocation3 + $0x36] sm:$0x1] %v3218_v0  ;;  %1819 = vmatprep.subr.bf16.mxu0 %v2904_v48 }
 0x23b   : > { %v1093_v8 = vmul.f32 %v2960_v6, %v3693_v44  ;;  %1103 = vst [vmem:[#allocation3 + $0x41] sm:$0x3f] %v1094_v5  ;;  %v2902_v44 = vld [vmem:[#allocation12 + $0x40] ss:$8 sps:$4 sm:$0xff]  }
 0x23c   : > { %v1117_v49 = vld [vmem:[#allocation3 + $0x28] sm:$0xff]  ;;  %2714 = vmatpush3.bf16.msra.mxu1 %v2888_v36  ;;  %1820 = vmatpush1.bf16.msra.mxu0 %v2902_v44  ;;  %v3780_v44 = vld [vmem:[%s3972_s5] ss:$0 sm:$0xff] }
 0x23d   : > { %1102 = vst [vmem:[#allocation3 + $0x39] sm:$0xff] %v1093_v8  ;;  %v1123_v10 = vpack.c.bf16 %v1117_v49, %v1116_v9  ;;  %2715 = vmatprep.subr.bf16.mxu1 %v3218_v0  ;;  %1821 = vmatprep.subr.bf16.mxu0 %v2907_v29 }
 0x23f   : > { %2660 = vmatmul.mubr.bf16.gmra.mxu1 %v1123_v10  ;;  %2696 = vmatmul.mubr.bf16.gmra.mxu0 %v1123_v10 }
 0x240   : > { %2663 = vmatprep.mubr.msk.bf16.mxu1 %vm3219_vm0, %v3218_v0  ;;  %2699 = vmatprep.mubr.msk.bf16.mxu0 %vm3219_vm0, %v3218_v0 }
 0x241   : > { %2716 = vmatpush3.bf16.msra.mxu1 %v2889_v11  ;;  %v1118_v14 = vld [vmem:[#allocation3 + $0x30] sm:$0xff]  ;;  %1822 = vmatpush1.bf16.msra.mxu0 %v2905_v30 }
 0x242   : > { %2717 = vmatprep.subr.bf16.mxu1 %v3218_v0 }
 0x244   : > { %v1119_v15 = vld [vmem:[#allocation3 + $0x38] sm:$0xff]  ;;  %v1120_v18 = vld [vmem:[#allocation3 + $0x40] sm:$0xff] }
 0x245   : > { %v1124_v16 = vpack.c.bf16 %v1119_v15, %v1118_v14  ;;  %2718 = vmatpush3.bf16.msra.mxu1 %v2890_v13  ;;  %v1125_v19 = vpack.c.bf16 %v1120_v18, %v1120_v18 }
 0x246   : > { %2719 = vmatprep.subr.bf16.mxu1 %v3218_v0 }
 0x247   : > { %2664 = vmatmul.mubr.bf16.gmra.mxu1 %v1124_v16  ;;  %2700 = vmatmul.mubr.bf16.gmra.mxu0 %v1124_v16 }
 0x248   : > { %2667 = vmatprep.mubr.msk.bf16.mxu1 %vm3219_vm0, %v3218_v0  ;;  %2703 = vmatprep.mubr.msk.bf16.mxu0 %vm3219_vm0, %v3218_v0 }
 0x249   : > { %2720 = vmatpush3.bf16.msra.mxu1 %v2891_v40 }
 0x24a   : > { %2721 = vmatprep.subr.bf16.mxu1 %v3218_v0 }
 0x24d   : > { %2722 = vmatpush3.bf16.msra.mxu1 %v2892_v17 }
 0x24f   : > { %2668 = vmatmul.mubr.bf16.gmra.mxu1 %v1125_v19  ;;  %2704 = vmatmul.mubr.bf16.gmra.mxu0 %v1125_v19 }
 0x250   : > { %2723 = vmatprep.mubr.msk.bf16.mxu1 %vm3219_vm0, %v3218_v0  ;;  %1845 = vmatprep.mubr.bf16.mxu0 %v3221_v39 }
 0x257   : > { %2724 = vmatmul.mubr.bf16.vlgmr.msra.gmra.mxu1 %v3703_v58 }
 0x258   : > { %2727 = vmatprep.mubr.msk.bf16.mxu1 %vm3219_vm0, %v3218_v0 }
 0x25f   : > { %2728 = vmatmul.mubr.bf16.gmra.mxu1 %v1122_v63 }
 0x260   : > { %2731 = vmatprep.mubr.msk.bf16.mxu1 %vm3219_vm0, %v3218_v0 }
 0x267   : > { %2732 = vmatmul.mubr.bf16.gmra.mxu1 %v1123_v10 }
 0x268   : > { %2735 = vmatprep.mubr.msk.bf16.mxu1 %vm3219_vm0, %v3218_v0 }
 0x26f   : > { %2736 = vmatmul.mubr.bf16.gmra.mxu1 %v1124_v16 }
 0x270   : > { %2739 = vmatprep.mubr.msk.bf16.mxu1 %vm3219_vm0, %v3218_v0  ;;  %v2910_v0 = vld [vmem:[#allocation12 + $0x24] ss:$8 sps:$4 sm:$0xff]  }
 0x271   : > { %1823 = vmatprep.subr.bf16.mxu0 %v2910_v0 }
 0x272   : > { %1824 = vmatpush1.bf16.msra.mxu0 %v2908_v31 }
 0x273   : > { %1825 = vmatprep.subr.bf16.mxu0 %v2913_v33 }
 0x276   : > { %1826 = vmatpush1.bf16.msra.mxu0 %v2911_v34 }
 0x277   : > { %2740 = vmatmul.mubr.bf16.gmra.mxu1 %v1125_v19  ;;  %1827 = vmatprep.subr.bf16.mxu0 %v2916_v35 }
 0x278   : > { %2034 = vmatprep.mubr.bf16.mxu1 %v3221_v39 }
 0x27a   : > { %1828 = vmatpush1.bf16.msra.mxu0 %v2914_v38 }
 0x2ee   : > { %v1224_v37 = vpop.f32.mrf.mxu1  ;;  %v1370_v42 = vpop.f32.mrf.mxu0 }
 0x2ef   : > { %v1417_v16 = vrot.slane %v1370_v42, 1 }
 0x2f0   : > { %v2653_v7 = vpop.f32.mrf.mxu1  ;;  %v2689_v43 = vpop.f32.mrf.mxu0 }
 0x2f2   : > { %v1227_v46 = vpop.f32.mrf.mxu1  ;;  %v1373_v47 = vpop.f32.mrf.mxu0 }
 0x2f3   : > { %v1418_v14 = vrot.slane %v1373_v47, 1 }
 0x2f4   : > { %v2654_v50 = vpop.f32.mrf.mxu1  ;;  %v2690_v51 = vpop.f32.mrf.mxu0 }
 0x2f5   : > { %v1419_v17 = vsel %vm798_vm3, %v1417_v16, %v1418_v14 }
 0x2f6   : > { %v1232_v52 = vpop.f32.mrf.mxu1  ;;  %v1378_v53 = vpop.f32.mrf.mxu0  ;;  %v1443_v20 = vadd.f32 %v1419_v17, %v1224_v37 }
 0x2f7   : > { %v1420_v18 = vrot.slane %v1378_v53, 1 }
 0x2f8   : > { %v2657_v41 = vpop.f32.mrf.mxu1  ;;  %v2693_v12 = vpop.f32.mrf.mxu0 }
 0x2f9   : > { %v1421_v26 = vsel %vm798_vm3, %v1418_v14, %v1420_v18 }
 0x2fa   : > { %v3752_v54 = vpop.f32.mrf.mxu1  ;;  %v1381_v23 = vpop.f32.mrf.mxu0  ;;  %v1444_v31 = vadd.f32 %v1421_v26, %v1227_v46 }
 0x2fb   : > { %v1422_v27 = vrot.slane %v1381_v23, 1 }
 0x2fc   : > { %v2658_v55 = vpop.f32.mrf.mxu1  ;;  %v2694_v56 = vpop.f32.mrf.mxu0 }
 0x2fd   : > { %v1423_v35 = vsel %vm798_vm3, %v1420_v18, %v1422_v27 }
 0x2fe   : > { %v1445_v50 = vadd.f32 %v1423_v35, %v1232_v52 }
 0x2ff   : > { %v3754_v57 = vpop.f32.mrf.mxu1  ;;  %v3756_v58 = vpop.f32.mrf.mxu0 }
 0x300   : > { %v1424_v38 = vrot.slane %v3756_v58, 1 }
 0x301   : > { %v2661_v24 = vpop.f32.mrf.mxu1  ;;  %v2697_v59 = vpop.f32.mrf.mxu0 }
 0x302   : > { %v1425_v53 = vsel %vm798_vm3, %v1422_v27, %v1424_v38 }
 0x303   : > { %v3758_v60 = vpop.f32.mrf.mxu1  ;;  %v3760_v28 = vpop.f32.mrf.mxu0  ;;  %v1446_v24 = vadd.f32 %v1425_v53, %v3752_v54 }
 0x304   : > { %v1426_v41 = vrot.slane %v3760_v28, 1 }
 0x305   : > { %v2662_v61 = vpop.f32.mrf.mxu1  ;;  %v2698_v62 = vpop.f32.mrf.mxu0 }
 0x306   : > { %v1427_v61 = vsel %vm798_vm3, %v1424_v38, %v1426_v41 }
 0x307   : > { %v3762_v45 = vpop.f32.mrf.mxu1  ;;  %v3764_v32 = vpop.f32.mrf.mxu0 }
 0x308   : > { %v1428_v62 = vrot.slane %v3764_v32, 1 }
 0x309   : > { %v2665_v63 = vpop.f32.mrf.mxu1  ;;  %v2701_v1 = vpop.f32.mrf.mxu0 }
 0x30b   : > { %v3766_v2 = vpop.f32.mrf.mxu1  ;;  %v3768_v3 = vpop.f32.mrf.mxu0 }
 0x30d   : > { %v2666_v4 = vpop.f32.mrf.mxu1  ;;  %v2702_v36 = vpop.f32.mrf.mxu0 }
 0x30f   : > { %v3770_v5 = vpop.f32.mrf.mxu1  ;;  %v3772_v6 = vpop.f32.mrf.mxu0 }
 0x311   : > { %v2669_v8 = vpop.f32.mrf.mxu1  ;;  %v2705_v9 = vpop.f32.mrf.mxu0 }
 0x312   : > { %v1447_v8 = vadd.f32 %v1427_v61, %v3754_v57 }
 0x313   : > { %v1259_v49 = vpop.f32.mrf.mxu1  ;;  %v1405_v10 = vpop.f32.mrf.mxu0 }
 0x314   : > { %v1429_v49 = vsel %vm798_vm3, %v1426_v41, %v1428_v62  ;;  %v1430_v10 = vrot.slane %v3768_v3, 1 }
 0x315   : > { %v2670_v11 = vpop.f32.mrf.mxu1  ;;  %v2706_v13 = vpop.f32.mrf.mxu0  ;;  %v1448_v16 = vadd.f32 %v1429_v49, %v3758_v60 }
 0x316   : > { %v1431_v18 = vsel %vm798_vm3, %v1428_v62, %v1430_v10 }
 0x317   : > { %v1551_v15 = vpop.f32.mrf.mxu1  ;;  %v1449_v60 = vadd.f32 %v1431_v18, %v3762_v45 }
 0x318   : > { %v1598_v21 = vrot.slane %v1551_v15, 2 }
 0x319   : > { %v2725_v40 = vpop.f32.mrf.mxu1 }
 0x31b   : > { %v1554_v19 = vpop.f32.mrf.mxu1 }
 0x31c   : > { %v1599_v22 = vrot.slane %v1554_v19, 2  ;;  %v1432_v19 = vrot.slane %v3772_v6, 1 }
 0x31d   : > { %v2726_v25 = vpop.f32.mrf.mxu1 }
 0x31e   : > { %v1600_v48 = vsel %vm980_vm4, %v1598_v21, %v1599_v22  ;;  %v1451_v38 = vadd.f32 %v1432_v19, %v3770_v5 }
 0x31f   : > { %v1624_v29 = vadd.f32 %v1600_v48, %v1443_v20  ;;  %v1559_v30 = vpop.f32.mrf.mxu1 }
 0x320   : > { %v1601_v0 = vrot.slane %v1559_v30, 2  ;;  %v1433_v30 = vsel %vm798_vm3, %v1430_v10, %v1432_v19 }
 0x321   : > { %v3783_v33 = vadd.f32 %v3780_v44, %v1624_v29  ;;  %v2729_v34 = vpop.f32.mrf.mxu1  ;;  %v1450_v45 = vadd.f32 %v1433_v30, %v3766_v2 }
 0x322   : > { %v1602_v37 = vsel %vm980_vm4, %v1599_v22, %v1601_v0 }
 0x323   : > { %v2371_v42 = vmul.f32 -1.442695, %v3783_v33  ;;  %v1625_v7 = vadd.f32 %v1602_v37, %v1444_v31  ;;  %v1562_v43 = vpop.f32.mrf.mxu1 }
 0x324   : > { %v1603_v47 = vrot.slane %v1562_v43, 2 }
 0x325   : > { %2961 = vpow2.f32 %v2371_v42  ;;  %v3790_v51 = vadd.f32 %v3780_v44, %v1625_v7  ;;  %v2730_v46 = vpop.f32.mrf.mxu1 }
 0x326   : > { %v1604_v12 = vsel %vm980_vm4, %v1601_v0, %v1603_v47 }
 0x327   : > { %v2372_v23 = vmul.f32 -1.442695, %v3790_v51  ;;  %v1626_v55 = vadd.f32 %v1604_v12, %v1445_v50  ;;  %v1567_v56 = vpop.f32.mrf.mxu1 }
 0x328   : > { %v1605_v58 = vrot.slane %v1567_v56, 2 }
 0x329   : > { %2963 = vpow2.f32 %v2372_v23  ;;  %v2733_v52 = vpop.f32.mrf.mxu1  ;;  %v3798_v59 = vadd.f32 %v3780_v44, %v1626_v55 }
 0x32a   : > { %v1606_v28 = vsel %vm980_vm4, %v1603_v47, %v1605_v58 }
 0x32b   : > { %v1627_v63 = vadd.f32 %v1606_v28, %v1446_v24  ;;  %v1570_v1 = vpop.f32.mrf.mxu1  ;;  %v2373_v4 = vmul.f32 -1.442695, %v3798_v59 }
 0x32c   : > { %v1607_v36 = vrot.slane %v1570_v1, 2 }
 0x32d   : > { %v2734_v9 = vpop.f32.mrf.mxu1  ;;  %v3806_v54 = vadd.f32 %v3780_v44, %v1627_v63  ;;  %2965 = vpow2.f32 %v2373_v4 }
 0x32e   : > { %v1608_v32 = vsel %vm980_vm4, %v1605_v58, %v1607_v36 }
 0x32f   : > { %v1628_v11 = vadd.f32 %v1608_v32, %v1447_v8  ;;  %v1575_v13 = vpop.f32.mrf.mxu1  ;;  %v2374_v14 = vmul.f32 -1.442695, %v3806_v54 }
 0x330   : > { %v1609_v15 = vrot.slane %v1575_v13, 2 }
 0x331   : > { %v2737_v40 = vpop.f32.mrf.mxu1  ;;  %2967 = vpow2.f32 %v2374_v14  ;;  %v3814_v57 = vadd.f32 %v3780_v44, %v1628_v11 }
 0x332   : > { %v2962_v17 = vpop.eup %2961  ;;  %v1610_v3 = vsel %vm980_vm4, %v1607_v36, %v1609_v15 }
 0x333   : > { %v1676_v21 = vadd.f32 1.0, %v2962_v17  ;;  %v1629_v22 = vadd.f32 %v1610_v3, %v1448_v16  ;;  %v1578_v20 = vpop.f32.mrf.mxu1  ;;  %v2375_v25 = vmul.f32 -1.442695, %v3814_v57 }
 0x334   : > { %v1611_v26 = vrot.slane %v1578_v20, 2 }
 0x335   : > { %v2738_v27 = vpop.f32.mrf.mxu1  ;;  %v3822_v48 = vadd.f32 %v3780_v44, %v1629_v22  ;;  %2969 = vpow2.f32 %v2375_v25 }
 0x336   : > { %v2964_v29 = vpop.eup %2963  ;;  %v1612_v0 = vsel %vm980_vm4, %v1609_v15, %v1611_v26  ;;  %2971 = vrcp.f32 %v1676_v21 }
 0x337   : > { %v1677_v6 = vadd.f32 1.0, %v2964_v29  ;;  %v1630_v31 = vadd.f32 %v1612_v0, %v1449_v60  ;;  %v1583_v34 = vpop.f32.mrf.mxu1  ;;  %v2376_v35 = vmul.f32 -1.442695, %v3822_v48 }
 0x338   : > { %v1613_v37 = vrot.slane %v1583_v34, 2 }
 0x339   : > { %2973 = vrcp.f32 %v1677_v6  ;;  %v2741_v42 = vpop.f32.mrf.mxu1  ;;  %v1646_v7 = vadd.f32 %v3780_v44, %v1630_v31 }
 0x33a   : > { %v2966_v43 = vpop.eup %2965  ;;  %v1614_v47 = vsel %vm980_vm4, %v1611_v26, %v1613_v37  ;;  %v1632_v50 = vadd.f32 %v1613_v37, %v1451_v38  ;;  %2975 = vpow2.f32 %v2376_v35 }
 0x33b   : > { %v1631_v46 = vadd.f32 %v1614_v47, %v1450_v45  ;;  %v1586_v53 = vpop.f32.mrf.mxu1  ;;  %v1678_v41 = vadd.f32 1.0, %v2966_v43  ;;  %v2377_v12 = vmul.f32 -1.442695, %v1646_v7 }
 0x33c   : > { %v1648_v23 = vadd.f32 %v3780_v44, %v1632_v50 }
 0x33d   : > { %v2742_v55 = vpop.f32.mrf.mxu1  ;;  %v1647_v5 = vadd.f32 %v3780_v44, %v1631_v46  ;;  %2977 = vpow2.f32 %v2377_v12 }
 0x33e   : > { %v2968_v56 = vpop.eup %2967  ;;  %v2379_v2 = vmul.f32 -1.442695, %v1648_v23  ;;  %2979 = vrcp.f32 %v1678_v41 }
 0x33f   : > { %v1679_v58 = vadd.f32 1.0, %v2968_v56  ;;  %v2378_v24 = vmul.f32 -1.442695, %v1647_v5 }
 0x340   : > { %2981 = vpow2.f32 %v2379_v2 }
 0x341   : > { %2983 = vrcp.f32 %v1679_v58 }
 0x342   : > { %2985 = vpow2.f32 %v2378_v24  ;;  %v2970_v52 = vpop.eup %2969 }
 0x343   : > { %v2972_v61 = vpop.eup %2971  ;;  %v1680_v62 = vadd.f32 1.0, %v2970_v52 }
 0x344   : > { %v1703_v1 = vmul.f32 %v2972_v61, %v3783_v33  ;;  %v2917_v61 = vld [vmem:[%s3974_s7 + $0x8] sm:$0xff]  }
 0x345   : > { %2987 = vrcp.f32 %v1680_v62  ;;  %v2923_v62 = vld [vmem:[%s3974_s7] sm:$0xff]  }
 0x346   : > { %v2974_v28 = vpop.eup %2973 }
 0x347   : > { %v2976_v63 = vpop.eup %2975  ;;  %v1704_v4 = vmul.f32 %v2974_v28, %v3790_v51  ;;  %v2918_v28 = vld [vmem:[%s3974_s7 + $0x10] sm:$0xff]  }
 0x348   : > { %v1681_v36 = vadd.f32 1.0, %v2976_v63  ;;  %v2919_v63 = vld [vmem:[%s3974_s7 + $0x18] sm:$0xff]  }
 0x349   : > { %v1712_v44 = vpack.c.bf16 %v1704_v4, %v1703_v1  ;;  %v2920_v1 = vld [vmem:[%s3974_s7 + $0x20] sm:$0xff]   ;;  %v2921_v4 = vld [vmem:[%s3974_s7 + $0x28] sm:$0xff]  }
 0x34a   : > { %2989 = vrcp.f32 %v1681_v36  ;;  %v2978_v8 = vpop.eup %2977  ;;  %v2922_v36 = vld [vmem:[%s3974_s7 + $0x30] sm:$0xff]  }
 0x34b   : > { %1846 = vmatmul.mubr.bf16.vlgmr.msra.gmra.mxu0 %v1712_v44  ;;  %v2980_v9 = vpop.eup %2979  ;;  %v1682_v49 = vadd.f32 1.0, %v2978_v8  ;;  %v2924_v44 = vld [vmem:[%s3974_s7 + $0x38] sm:$0xff]  }
 0x34c   : > { %1855 = vmatprep.mubr.bf16.mxu0 %v3221_v39  ;;  %v1705_v13 = vmul.f32 %v2980_v9, %v3798_v59 }
 0x34d   : > { %v2982_v10 = vpop.eup %2981  ;;  %2991 = vrcp.f32 %v1682_v49 }
 0x34e   : > { %v2984_v32 = vpop.eup %2983  ;;  %v1684_v15 = vadd.f32 1.0, %v2982_v10 }
 0x34f   : > { %v2986_v11 = vpop.eup %2985  ;;  %v1706_v14 = vmul.f32 %v2984_v32, %v3806_v54 }
 0x350   : > { %v1683_v33 = vadd.f32 1.0, %v2986_v11 }
 0x351   : > { %v1713_v51 = vpack.c.bf16 %v1706_v14, %v1705_v13 }
 0x352   : > { %2993 = vrcp.f32 %v1683_v33  ;;  %v2988_v16 = vpop.eup %2987 }
 0x353   : > { %1856 = vmatmul.mubr.bf16.gmra.mxu0 %v1713_v51  ;;  %2995 = vrcp.f32 %v1684_v15  ;;  %v1707_v17 = vmul.f32 %v2988_v16, %v3814_v57 }
 0x354   : > { %1865 = vmatprep.mubr.bf16.mxu0 %v3221_v39 }
 0x357   : > { %v2990_v40 = vpop.eup %2989 }
 0x358   : > { %v1708_v18 = vmul.f32 %v2990_v40, %v3822_v48 }
 0x35a   : > { %v1714_v19 = vpack.c.bf16 %v1708_v18, %v1707_v17  ;;  %v2992_v59 = vpop.eup %2991 }
 0x35b   : > { %v1709_v3 = vmul.f32 %v2992_v59, %v1646_v7 }
 0x35c   : > { %1866 = vmatmul.mubr.bf16.gmra.mxu0 %v1714_v19 }
 0x35d   : > { %1875 = vmatprep.mubr.bf16.mxu0 %v3221_v39 }
 0x35f   : > { %v2994_v54 = vpop.eup %2993 }
 0x360   : > { %v1710_v21 = vmul.f32 %v2994_v54, %v1647_v5  ;;  %v2996_v20 = vpop.eup %2995 }
 0x361   : > { %v1711_v25 = vmul.f32 %v2996_v20, %v1648_v23 }
 0x362   : > { %v1715_v22 = vpack.c.bf16 %v1710_v21, %v1709_v3 }
 0x363   : > { %v1716_v26 = vpack.c.bf16 %v1711_v25, %v1711_v25 }
 0x364   : > { %1876 = vmatmul.mubr.bf16.gmra.mxu0 %v1715_v22 }
 0x365   : > { %1885 = vmatprep.mubr.bf16.mxu0 %v3221_v39 }
 0x36c   : > { %1886 = vmatmul.mubr.bf16.gmra.mxu0 %v1716_v26 }
 0x36d   : > { %2024 = vmatprep.mubr.bf16.mxu0 %v3221_v39 }
 0x40b   : > { %v1847_v57 = vpop.f32.mrf.mxu0 }
 0x40d   : > { %v1849_v60 = vpop.f32.mrf.mxu0 }
 0x40f   : > { %v1851_v27 = vpop.f32.mrf.mxu0 }
 0x410   : > { %v1910_v52 = vpack.c.bf16 %v1851_v27, %v1847_v57 }
 0x411   : > { %v1853_v48 = vpop.f32.mrf.mxu0 }
 0x412   : > { %v1911_v24 = vpack.c.bf16 %v1853_v48, %v1849_v60 }
 0x413   : > { %v1857_v29 = vpop.f32.mrf.mxu0 }
 0x415   : > { %v1859_v30 = vpop.f32.mrf.mxu0 }
 0x417   : > { %v1861_v0 = vpop.f32.mrf.mxu0 }
 0x418   : > { %v1912_v58 = vpack.c.bf16 %v1861_v0, %v1857_v29 }
 0x419   : > { %v1863_v6 = vpop.f32.mrf.mxu0 }
 0x41a   : > { %v1913_v2 = vpack.c.bf16 %v1863_v6, %v1859_v30 }
 0x41c   : > { %v1867_v31 = vpop.f32.mrf.mxu0 }
 0x41e   : > { %v1869_v34 = vpop.f32.mrf.mxu0 }
 0x420   : > { %v1871_v35 = vpop.f32.mrf.mxu0 }
 0x421   : > { %v1914_v56 = vpack.c.bf16 %v1871_v35, %v1867_v31 }
 0x422   : > { %v1873_v38 = vpop.f32.mrf.mxu0 }
 0x423   : > { %v1915_v5 = vpack.c.bf16 %v1873_v38, %v1869_v34 }
 0x424   : > { %v1877_v37 = vpop.f32.mrf.mxu0 }
 0x426   : > { %v1879_v45 = vpop.f32.mrf.mxu0 }
 0x428   : > { %v1881_v42 = vpop.f32.mrf.mxu0 }
 0x429   : > { %v1916_v55 = vpack.c.bf16 %v1881_v42, %v1877_v37 }
 0x42a   : > { %v1883_v7 = vpop.f32.mrf.mxu0 }
 0x42b   : > { %v1917_v41 = vpack.c.bf16 %v1883_v7, %v1879_v45 }
 0x42c   : > { %v1887_v43 = vpop.f32.mrf.mxu0 }
 0x42d   : > { %v1918_v47 = vpack.c.bf16 %v1887_v43, %v1887_v43 }
 0x42e   : > { %v1889_v50 = vpop.f32.mrf.mxu0 }
 0x42f   : > { %v1919_v46 = vpack.c.bf16 %v1889_v50, %v1889_v50  ;;  %v1987_v12 = vsel %vm1985_vm5, %v1918_v47, 0 }
 0x430   : > { %v1891_v53 = vpop.f32.mrf.mxu0 }
 0x431   : > { %2404 = vmatprep.subr.msk.bf16.mxu0 %vm1985_vm5, %v1919_v46  ;;  %2743 = vmatprep.subr.msk.bf16.mxu1 %vm1985_vm5, %v1919_v46 }
 0x432   : > { %v1892_v23 = vpop.f32.mrf.mxu0  ;;  %1999 = vmatpush1.bf16.msra.mxu0 %v1987_v12  ;;  %2748 = vmatpush1.bf16.msra.mxu1 %v1987_v12 }
 0x433   : > { %2000 = vmatprep.subr.bf16.mxu0 %v1917_v41  ;;  %2744 = vmatprep.subr.bf16.mxu1 %v1917_v41 }
 0x436   : > { %2001 = vmatpush1.bf16.msra.mxu0 %v1916_v55  ;;  %2749 = vmatpush1.bf16.msra.mxu1 %v1916_v55 }
 0x437   : > { %2002 = vmatprep.subr.bf16.mxu0 %v1915_v5  ;;  %2745 = vmatprep.subr.bf16.mxu1 %v1915_v5 }
 0x43a   : > { %2003 = vmatpush1.bf16.msra.mxu0 %v1914_v56  ;;  %2750 = vmatpush1.bf16.msra.mxu1 %v1914_v56 }
 0x43b   : > { %2004 = vmatprep.subr.bf16.mxu0 %v1913_v2  ;;  %2746 = vmatprep.subr.bf16.mxu1 %v1913_v2 }
 0x43e   : > { %2005 = vmatpush1.bf16.msra.mxu0 %v1912_v58  ;;  %2751 = vmatpush1.bf16.msra.mxu1 %v1912_v58 }
 0x43f   : > { %2006 = vmatprep.subr.bf16.mxu0 %v1911_v24  ;;  %2747 = vmatprep.subr.bf16.mxu1 %v1911_v24 }
 0x442   : > { %2007 = vmatpush1.bf16.msra.mxu0 %v1910_v52  ;;  %2752 = vmatpush1.bf16.msra.mxu1 %v1910_v52 }
 0x445   : > { %2406 = vmatmul.mubr.msk.bf16.vlgmr.msra.gmra.mxu1 %vm1960_vm6, %v2917_v61  ;;  %2405 = vmatmul.mubr.msk.bf16.vlgmr.msra.gmra.mxu0 %vm1960_vm6, %v2923_v62 }
 0x446   : > { %2044 = vmatprep.mubr.bf16.mxu1 %v3221_v39 }
 0x44d   : > { %2407 = vmatmul.mubr.msk.bf16.gmra.mxu1 %vm1960_vm6, %v2918_v28 }
 0x44e   : > { %2054 = vmatprep.mubr.bf16.mxu1 %v3221_v39 }
 0x455   : > { %2408 = vmatmul.mubr.msk.bf16.gmra.mxu1 %vm1960_vm6, %v2919_v63 }
 0x456   : > { %2064 = vmatprep.mubr.bf16.mxu1 %v3221_v39 }
 0x45d   : > { %2409 = vmatmul.mubr.msk.bf16.gmra.mxu1 %vm1960_vm6, %v2920_v1 }
 0x45e   : > { %2074 = vmatprep.mubr.bf16.mxu1 %v3221_v39 }
 0x465   : > { %2410 = vmatmul.mubr.msk.bf16.gmra.mxu1 %vm1960_vm6, %v2921_v4 }
 0x466   : > { %2084 = vmatprep.mubr.bf16.mxu1 %v3221_v39 }
 0x46d   : > { %2411 = vmatmul.mubr.msk.bf16.gmra.mxu1 %vm1960_vm6, %v2922_v36 }
 0x46e   : > { %2094 = vmatprep.mubr.bf16.mxu1 %v3221_v39 }
 0x475   : > { %2412 = vmatmul.mubr.msk.bf16.gmra.mxu1 %vm1960_vm6, %v2924_v44 }
 0x505   : > { %v2036_v8 = vpop.f32.mrf.mxu1  ;;  %v2026_v9 = vpop.f32.mrf.mxu0 }
 0x506   : > { %2109 = vst [vmem:[%s3883_s25 + $0x20] sm:$0xff] %v2036_v8  ;;  %2105 = vst [vmem:[%s3883_s25] sm:$0xff] %v2026_v9 }
 0x507   : > { %v2038_v39 = vpop.f32.mrf.mxu1  ;;  %v2028_v49 = vpop.f32.mrf.mxu0 }
 0x508   : > { %2110 = vst [vmem:[%s3883_s25 + $0x28] sm:$0xff] %v2038_v39  ;;  %2106 = vst [vmem:[%s3883_s25 + $0x8] sm:$0xff] %v2028_v49 }
 0x509   : > { %v2040_v10 = vpop.f32.mrf.mxu1  ;;  %v2030_v32 = vpop.f32.mrf.mxu0 }
 0x50a   : > { %2111 = vst [vmem:[%s3883_s25 + $0x30] sm:$0xff] %v2040_v10  ;;  %2107 = vst [vmem:[%s3883_s25 + $0x10] sm:$0xff] %v2030_v32 }
 0x50b   : > { %v2042_v11 = vpop.f32.mrf.mxu1  ;;  %v2032_v13 = vpop.f32.mrf.mxu0 }
 0x50c   : > { %2112 = vst [vmem:[%s3883_s25 + $0x38] sm:$0xff] %v2042_v11  ;;  %2108 = vst [vmem:[%s3883_s25 + $0x18] sm:$0xff] %v2032_v13 }
 0x50d   : > { %v2046_v14 = vpop.f32.mrf.mxu1 }
 0x50e   : > { %2413 = vst [vmem:[%s3883_s25 + $0x40] sm:$0xff] %v2046_v14 }
 0x50f   : > { %v2048_v33 = vpop.f32.mrf.mxu1 }
 0x510   : > { %2414 = vst [vmem:[%s3883_s25 + $0x48] sm:$0xff] %v2048_v33 }
 0x511   : > { %v2050_v51 = vpop.f32.mrf.mxu1 }
 0x512   : > { %2415 = vst [vmem:[%s3883_s25 + $0x50] sm:$0xff] %v2050_v51 }
 0x513   : > { %v2052_v15 = vpop.f32.mrf.mxu1 }
 0x514   : > { %2416 = vst [vmem:[%s3883_s25 + $0x58] sm:$0xff] %v2052_v15 }
 0x515   : > { %v2056_v16 = vpop.f32.mrf.mxu1 }
 0x516   : > { %2417 = vst [vmem:[%s3883_s25 + $0x60] sm:$0xff] %v2056_v16 }
 0x517   : > { %v2058_v40 = vpop.f32.mrf.mxu1 }
 0x518   : > { %2418 = vst [vmem:[%s3883_s25 + $0x68] sm:$0xff] %v2058_v40 }
 0x519   : > { %v2060_v17 = vpop.f32.mrf.mxu1 }
 0x51a   : > { %2419 = vst [vmem:[%s3883_s25 + $0x70] sm:$0xff] %v2060_v17 }
 0x51b   : > { %v2062_v18 = vpop.f32.mrf.mxu1 }
 0x51c   : > { %2420 = vst [vmem:[%s3883_s25 + $0x78] sm:$0xff] %v2062_v18 }
 0x51d   : > { %v2066_v19 = vpop.f32.mrf.mxu1 }
 0x51e   : > { %2421 = vst [vmem:[%s3883_s25 + $0x80] sm:$0xff] %v2066_v19 }
 0x51f   : > { %v2068_v59 = vpop.f32.mrf.mxu1 }
 0x520   : > { %2422 = vst [vmem:[%s3883_s25 + $0x88] sm:$0xff] %v2068_v59 }
 0x521   : > { %v2070_v54 = vpop.f32.mrf.mxu1 }
 0x522   : > { %2423 = vst [vmem:[%s3883_s25 + $0x90] sm:$0xff] %v2070_v54 }
 0x523   : > { %v2072_v3 = vpop.f32.mrf.mxu1 }
 0x524   : > { %2424 = vst [vmem:[%s3883_s25 + $0x98] sm:$0xff] %v2072_v3 }
 0x525   : > { %v2076_v21 = vpop.f32.mrf.mxu1 }
 0x526   : > { %2425 = vst [vmem:[%s3883_s25 + $0xa0] sm:$0xff] %v2076_v21 }
 0x527   : > { %v2078_v22 = vpop.f32.mrf.mxu1 }
 0x528   : > { %2426 = vst [vmem:[%s3883_s25 + $0xa8] sm:$0xff] %v2078_v22 }
 0x529   : > { %v2080_v20 = vpop.f32.mrf.mxu1 }
 0x52a   : > { %2427 = vst [vmem:[%s3883_s25 + $0xb0] sm:$0xff] %v2080_v20 }
 0x52b   : > { %v2082_v25 = vpop.f32.mrf.mxu1 }
 0x52c   : > { %2428 = vst [vmem:[%s3883_s25 + $0xb8] sm:$0xff] %v2082_v25 }
 0x52d   : > { %v2086_v26 = vpop.f32.mrf.mxu1 }
 0x52e   : > { %2429 = vst [vmem:[%s3883_s25 + $0xc0] sm:$0xff] %v2086_v26 }
 0x52f   : > { %v2088_v57 = vpop.f32.mrf.mxu1 }
 0x530   : > { %2430 = vst [vmem:[%s3883_s25 + $0xc8] sm:$0xff] %v2088_v57 }
 0x531   : > { %v2090_v60 = vpop.f32.mrf.mxu1 }
 0x532   : > { %2431 = vst [vmem:[%s3883_s25 + $0xd0] sm:$0xff] %v2090_v60 }
 0x533   : > { %v2092_v27 = vpop.f32.mrf.mxu1 }
 0x534   : > { %2432 = vst [vmem:[%s3883_s25 + $0xd8] sm:$0xff] %v2092_v27 }
 0x535   : > { %v2096_v48 = vpop.f32.mrf.mxu1 }
 0x536   : > { %2433 = vst [vmem:[%s3883_s25 + $0xe0] sm:$0xff] %v2096_v48 }
 0x537   : > { %v2098_v29 = vpop.f32.mrf.mxu1 }
 0x538   : > { %2434 = vst [vmem:[%s3883_s25 + $0xe8] sm:$0xff] %v2098_v29 }
 0x539   : > { %v2100_v30 = vpop.f32.mrf.mxu1 }
 0x53a   : > { %2435 = vst [vmem:[%s3883_s25 + $0xf0] sm:$0xff] %v2100_v30 }
 0x53b   : > { %v2102_v0 = vpop.f32.mrf.mxu1 }
 0x53c   : > { %2436 = vst [vmem:[%s3883_s25 + $0xf8] sm:$0xff] %v2102_v0 }
 0x53d   : > { %3144 = shalt.err (!%p3141_p13)
}
 0x53e   : > { %s3145_s22 = scalar_lea.hbm %s3920_s26, 4096  ;;  %s3149_s24 = scalar_lea.hbm %s3975_s8, 8192 }
 0x53f   : > { %p3146_p6 = scmp.ne.s32.totalorder %s3920_s26, %s3145_s22  ;;  %p3150_p11 = scmp.lt.s32.totalorder %s3920_s26, %s3975_s8 }
 0x540   : > { %p3151_p4 = scmp.lt.s32.totalorder %s3149_s24, %s3145_s22 }
 0x541   : > { %p3147_p1 = pnand %p3146_p6, %p4011_p5 }
 0x542   : > { %p3152_p12 = por %p3151_p4, %p3150_p11 }
 0x543   : > { %p3148_p8 = pneg %p3147_p1 }
 0x545   : > { %p3153_p0 = pnand %p3152_p12, %p3148_p8 }
 0x547   : > { %3156 = shalt.err (!%p3153_p0)
}
 0x548   : > { %s3223_s11 = smov 256   ;;  %s3224_s2 = smov 16  }
 0x549   : > { %2769 = dma.vmem_to_hbm [thread:$0]  (%p4011_p5), %s3922_s17, 4096, %s3920_s26, %s2141_s20, %s3223_s11, %s3223_s11, %s3224_s2  }
 0x54a PF: > { %s2170_s6 = sand.u32 1, %s3195_s27   ;;  %p4012_p3 = scmp.ne.s32.totalorder %s3992_s12, 0 }
 0x54b   : > { %p4013_p7 = scmp.ge.s32.totalorder %s3207_s30, 2  ;;  %s2171_s25 = scalar_lea.sflag [#allocation6], %s2170_s6 }
 0x54d   : > { %p2789_p9 = pnand %p4013_p7, %p4012_p3 }
 0x54f   : > { %p2790_p2 = pneg %p2789_p9 }
 0x551   : > { %3190 = dma.done.wait (%p2790_p2), %s2171_s25, 4096  }
 0x552   : > { %3192 = vsyncadd (%p2790_p2), %s2171_s25, 4294963200  ;;  %s4014_s30 = sld [smem:[#allocation20_spill]]  ;;  %s4017_s27 = smov %s3199_s28 }
 0x553   : > { %s4015_s21 = sld [smem:[#allocation19_spill]] }
 0x554   : > { %s4016_s29 = sld [smem:[#allocation21_spill]] }
 0x558   : > { %p25_p10 = scmp.ge.s32.totalorder %s4014_s30, 4  }
 0x559   : > { %s4018_s28 = smov %s4015_s21 }
 0x55a   :  { %27 = sbr.rel (!%p25_p10) target bundleno = 13 (0xd), region = 135 }
 0x55f   :  { %2176 = vsyncpa [#allocation5], 1 }
 0x560   :  { %2178 = vsyncpa [#allocation5 + $0x1], 1 }
 0x561   :  { %2179 = vsyncpa [#allocation8], 1 }
 0x562   :  { %2181 = vsyncpa [#allocation8 + $0x1], 1 }
 0x563   :  { %2182 = vsyncpa [#allocation11], 1 }
 0x564   :  { %2183 = vsyncpa [#allocation6], 1 }
 0x565   :  { %2185 = vsyncpa [#allocation6 + $0x1], 1 }

</bundles_post_ra>
